<compile_context>
chip_gen: v7x
topology: tpu7x:2x2x1
jax: 0.10.0
libtpu: 0.0.40
codegen_flags: <defaults>
</compile_context>

<pallas_src>
import math
import functools

import jax
import jax.numpy as jnp
from jax import lax
from jax.experimental import pallas as pl
from jax.experimental.pallas import tpu as pltpu


# ----------------------------- fused Pallas kernel ------------------------------

def _fused_block_kernel(
    x_ref, c_ref,
    wq1_ref, bq1_ref, wkv1_ref, bkv1_ref,
    wp1_ref, bp1_ref, g1_ref, be1_ref,
    wqkv2_ref, bqkv2_ref,
    wp2_ref, bp2_ref, g2_ref, be2_ref,
    o_ref,
    *, num_heads, head_dim, eps,
):
    D = num_heads * head_dim
    x = x_ref[0]          # (Sq, D)   float32
    c = c_ref[0]          # (Sk, Cd)  float32
    Sq = x.shape[0]

    def mha(q_all, k_all, v_all, wp_ref):
        # q_all: (Sq, H*Dh); k_all/v_all: (Skv, H*Dh); wp_ref: (H, Dh, D)
        # Returns dense(concat_h(ctx_h)) as an accumulated sum of per-head matmuls.
        acc = jnp.zeros((Sq, D), dtype=jnp.float32)
        for h in range(num_heads):
            lo = h * head_dim
            hi = lo + head_dim
            qh = q_all[:, lo:hi]                          # (Sq, Dh)
            kh = k_all[:, lo:hi]                          # (Skv, Dh)
            vh = v_all[:, lo:hi]                          # (Skv, Dh)
            # scores (scale already folded into q weights/bias)
            s = lax.dot_general(qh, kh, (((1,), (1,)), ((), ())),
                                preferred_element_type=jnp.float32)   # (Sq, Skv)
            m = jnp.max(s, axis=-1, keepdims=True)
            p = jnp.exp(s - m)
            l = jnp.sum(p, axis=-1, keepdims=True)
            # defer softmax normalization until after PV (divide the small (Sq,Dh) tile)
            ctx = jnp.dot(p, vh, preferred_element_type=jnp.float32) / l   # (Sq, Dh)
            acc = acc + jnp.dot(ctx, wp_ref[h], preferred_element_type=jnp.float32)
        return acc

    def layernorm(y, g, b):
        mu = jnp.mean(y, axis=-1, keepdims=True)
        var = jnp.mean((y - mu) ** 2, axis=-1, keepdims=True)
        return (y - mu) * lax.rsqrt(var + eps) * g + b

    # ---- cross attention (Q scale pre-folded; K/V projections merged) ----
    q1 = jnp.dot(x, wq1_ref[...], preferred_element_type=jnp.float32) + bq1_ref[...]      # (Sq, D)
    kv1 = jnp.dot(c, wkv1_ref[...], preferred_element_type=jnp.float32) + bkv1_ref[...]   # (Sk, 2D)
    h1 = mha(q1, kv1[:, :D], kv1[:, D:], wp1_ref) + bp1_ref[...]                          # (Sq, D)
    x1 = layernorm(h1 + x, g1_ref[...], be1_ref[...])                                     # (Sq, D)

    # ---- self attention (merged QKV projection) ----
    qkv = jnp.dot(x1, wqkv2_ref[...], preferred_element_type=jnp.float32) + bqkv2_ref[...]  # (Sq, 3D)
    h2 = mha(qkv[:, :D], qkv[:, D:2 * D], qkv[:, 2 * D:], wp2_ref) + bp2_ref[...]
    x2 = layernorm(h2 + x1, g2_ref[...], be2_ref[...])

    o_ref[0] = x2.astype(o_ref.dtype)


def cross_self_attention_block(x, cross, prepped):
    """x: (B, Sq, dim); cross: (B, Sk, cross_dim) -> (B, Sq, dim)."""
    B, Sq, D = x.shape
    Sk, Cd = cross.shape[1], cross.shape[2]
    H = prepped["num_heads"]
    Dh = D // H

    def full(shape):
        n = len(shape)
        return pl.BlockSpec(shape, lambda b, _n=n: (0,) * _n)

    kernel = functools.partial(_fused_block_kernel, num_heads=H, head_dim=Dh, eps=1e-6)

    return pl.pallas_call(
        kernel,
        out_shape=jax.ShapeDtypeStruct((B, Sq, D), x.dtype),
        grid=(B,),
        in_specs=[
            pl.BlockSpec((1, Sq, D), lambda b: (b, 0, 0)),
            pl.BlockSpec((1, Sk, Cd), lambda b: (b, 0, 0)),
            full((D, D)), full((1, D)),                 # cross-attn Q (scaled)
            full((Cd, 2 * D)), full((1, 2 * D)),        # cross-attn fused K|V
            full((H, Dh, D)), full((1, D)),             # projector_1 dense (per-head) + bias
            full((1, D)), full((1, D)),                 # projector_1 LN gamma / beta
            full((D, 3 * D)), full((1, 3 * D)),         # self-attn fused Q|K|V (Q scaled)
            full((H, Dh, D)), full((1, D)),             # projector_2 dense (per-head) + bias
            full((1, D)), full((1, D)),                 # projector_2 LN gamma / beta
        ],
        out_specs=pl.BlockSpec((1, Sq, D), lambda b: (b, 0, 0)),
        compiler_params=pltpu.CompilerParams(
            dimension_semantics=("parallel",),
        ),
    )(
        x, cross,
        prepped["wq1"], prepped["bq1"], prepped["wkv1"], prepped["bkv1"],
        prepped["wp1"], prepped["bp1"], prepped["g1"], prepped["be1"],
        prepped["wqkv2"], prepped["bqkv2"],
        prepped["wp2"], prepped["bp2"], prepped["g2"], prepped["be2"],
    )


# ----------------- one-time host-side parameter preparation -----------------

def prepare_params(p):
    """Pre-transpose / fuse PyTorch-layout weights once (no per-call XLA transposes)."""
    H = p["num_heads"]
    D = p["ca_q_w"].shape[0]
    Dh = D // H
    scale = 1.0 / math.sqrt(Dh)
    f32 = jnp.float32
    return {
        "num_heads": H,
        # cross-attention: Q weight/bias with 1/sqrt(Dh) folded in; K|V fused along output axis
        "wq1": (p["ca_q_w"].T * scale).astype(f32),                                   # (D, D)
        "bq1": (p["ca_q_b"] * scale).reshape(1, D).astype(f32),
        "wkv1": jnp.concatenate([p["ca_k_w"].T, p["ca_v_w"].T], axis=1).astype(f32),  # (Cd, 2D)
        "bkv1": jnp.concatenate([p["ca_k_b"], p["ca_v_b"]]).reshape(1, 2 * D).astype(f32),
        # projector_1: dense weight split per head so head-merge + projection fuse into a sum
        "wp1": p["p1_w"].T.reshape(H, Dh, D).astype(f32),
        "bp1": p["p1_b"].reshape(1, D).astype(f32),
        "g1": p["p1_gamma"].reshape(1, D).astype(f32),
        "be1": p["p1_beta"].reshape(1, D).astype(f32),
        # self-attention: fused Q|K|V projection (Q part pre-scaled)
        "wqkv2": jnp.concatenate(
            [p["sa_q_w"].T * scale, p["sa_k_w"].T, p["sa_v_w"].T], axis=1).astype(f32),  # (D, 3D)
        "bqkv2": jnp.concatenate(
            [p["sa_q_b"] * scale, p["sa_k_b"], p["sa_v_b"]]).reshape(1, 3 * D).astype(f32),
        # projector_2
        "wp2": p["p2_w"].T.reshape(H, Dh, D).astype(f32),
        "bp2": p["p2_b"].reshape(1, D).astype(f32),
        "g2": p["p2_gamma"].reshape(1, D).astype(f32),
        "be2": p["p2_beta"].reshape(1, D).astype(f32),
    }


# ------------------------------ reference (JAX) -----------------------------

def _ref_block(x, cross, p):
    B, Sq, D = x.shape
    H = p["num_heads"]
    Dh = D // H

    def lin(inp, w, b):
        return inp @ w.T + b

    def attn(q, k, v):
        s = jnp.einsum("bhqd,bhkd->bhqk", q, k) / math.sqrt(Dh)
        a = jax.nn.softmax(s, axis=-1)
        return jnp.einsum("bhqk,bhkd->bhqd", a, v)

    def sh(t, S):
        return t.reshape(B, S, H, Dh).transpose(0, 2, 1, 3)

    def res_ln(h, r, w, b, g, beta):
        y = h @ w.T + b + r
        mu = y.mean(-1, keepdims=True)
        var = ((y - mu) ** 2).mean(-1, keepdims=True)
        return (y - mu) / jnp.sqrt(var + 1e-6) * g + beta

    Sk = cross.shape[1]
    q = sh(lin(x, p["ca_q_w"], p["ca_q_b"]), Sq)
    k = sh(lin(cross, p["ca_k_w"], p["ca_k_b"]), Sk)
    v = sh(lin(cross, p["ca_v_w"], p["ca_v_b"]), Sk)
    ctx = attn(q, k, v).transpose(0, 2, 1, 3).reshape(B, Sq, D)
    x1 = res_ln(ctx, x, p["p1_w"], p["p1_b"], p["p1_gamma"], p["p1_beta"])

    q2 = sh(lin(x1, p["sa_q_w"], p["sa_q_b"]), Sq)
    k2 = sh(lin(x1, p["sa_k_w"], p["sa_k_b"]), Sq)
    v2 = sh(lin(x1, p["sa_v_w"], p["sa_v_b"]), Sq)
    ctx2 = attn(q2, k2, v2).transpose(0, 2, 1, 3).reshape(B, Sq, D)
    x2 = res_ln(ctx2, x1, p["p2_w"], p["p2_b"], p["p2_gamma"], p["p2_beta"])
    return x2


# ---------------------------------- main ------------------------------------

def init_params(key, dim, cross_dim, num_heads):
    keys = jax.random.split(key, 16)
    s = 0.05

    def w(k, shape):
        return jax.random.normal(k, shape, jnp.float32) * s

    return {
        "num_heads": num_heads,
        # cross-attention projections (PyTorch layout: (out, in))
        "ca_q_w": w(keys[0], (dim, dim)),       "ca_q_b": w(keys[1], (dim,)),
        "ca_k_w": w(keys[2], (dim, cross_dim)), "ca_k_b": w(keys[3], (dim,)),
        "ca_v_w": w(keys[4], (dim, cross_dim)), "ca_v_b": w(keys[5], (dim,)),
        # projector_1
        "p1_w": w(keys[6], (dim, dim)), "p1_b": w(keys[7], (dim,)),
        "p1_gamma": jnp.ones((dim,), jnp.float32), "p1_beta": jnp.zeros((dim,), jnp.float32),
        # self-attention projections
        "sa_q_w": w(keys[8], (dim, dim)),  "sa_q_b": w(keys[9], (dim,)),
        "sa_k_w": w(keys[10], (dim, dim)), "sa_k_b": w(keys[11], (dim,)),
        "sa_v_w": w(keys[12], (dim, dim)), "sa_v_b": w(keys[13], (dim,)),
        # projector_2
        "p2_w": w(keys[14], (dim, dim)), "p2_b": w(keys[15], (dim,)),
        "p2_gamma": jnp.ones((dim,), jnp.float32), "p2_beta": jnp.zeros((dim,), jnp.float32),
    }


if __name__ == "__main__":
    B, Sq, Sk = 2, 8, 12
    dim, cross_dim, num_heads = 32, 16, 4
    # mlp_dim / max_seq_len from the PyTorch __init__ do not affect the forward pass.

    root = jax.random.PRNGKey(0)
    kx, kc, kp = jax.random.split(root, 3)
    x = jax.random.normal(kx, (B, Sq, dim), jnp.float32)
    cross = jax.random.normal(kc, (B, Sk, cross_dim), jnp.float32)
    params = init_params(kp, dim, cross_dim, num_heads)
    prepped = prepare_params(params)   # one-time weight transpose / fusion

    out = cross_self_attention_block(x, cross, prepped)
    out = jax.block_until_ready(out)

    ref = _ref_block(x, cross, params)
    assert out.shape == (B, Sq, dim)
    assert jnp.allclose(out, ref, atol=1e-4, rtol=1e-4), \
        f"max abs err {jnp.max(jnp.abs(out - ref))}"

    print("KERNEL_OK")
</pallas_src>

<mosaic_0001>
module attributes {stable_mosaic.version = 11 : i64} {
  func.func @_fused_block_kernel(%arg0: i32, %arg1: memref<1x8x32xf32, #tpu.memory_space<vmem>>, %arg2: memref<1x12x16xf32, #tpu.memory_space<vmem>>, %arg3: memref<32x32xf32, #tpu.memory_space<vmem>>, %arg4: memref<1x32xf32, #tpu.memory_space<vmem>>, %arg5: memref<16x64xf32, #tpu.memory_space<vmem>>, %arg6: memref<1x64xf32, #tpu.memory_space<vmem>>, %arg7: memref<4x8x32xf32, #tpu.memory_space<vmem>>, %arg8: memref<1x32xf32, #tpu.memory_space<vmem>>, %arg9: memref<1x32xf32, #tpu.memory_space<vmem>>, %arg10: memref<1x32xf32, #tpu.memory_space<vmem>>, %arg11: memref<32x96xf32, #tpu.memory_space<vmem>>, %arg12: memref<1x96xf32, #tpu.memory_space<vmem>>, %arg13: memref<4x8x32xf32, #tpu.memory_space<vmem>>, %arg14: memref<1x32xf32, #tpu.memory_space<vmem>>, %arg15: memref<1x32xf32, #tpu.memory_space<vmem>>, %arg16: memref<1x32xf32, #tpu.memory_space<vmem>>, %arg17: memref<1x8x32xf32, #tpu.memory_space<vmem>>) attributes {dimension_semantics = [#tpu.dimension_semantics<parallel>], iteration_bounds = array<i64: 2>, scalar_prefetch = 0 : i64, scratch_operands = 0 : i64, tpu.core_type = #tpu.core_type<tc>, window_params = [{transform_indices = @transform_0, window_bounds = array<i64: 1, 8, 32>}, {transform_indices = @transform_1, window_bounds = array<i64: 1, 12, 16>}, {pipeline_mode = #tpu.pipeline_mode<synchronous>, transform_indices = @transform_2, window_bounds = array<i64: 32, 32>}, {pipeline_mode = #tpu.pipeline_mode<synchronous>, transform_indices = @transform_3, window_bounds = array<i64: 1, 32>}, {pipeline_mode = #tpu.pipeline_mode<synchronous>, transform_indices = @transform_4, window_bounds = array<i64: 16, 64>}, {pipeline_mode = #tpu.pipeline_mode<synchronous>, transform_indices = @transform_5, window_bounds = array<i64: 1, 64>}, {pipeline_mode = #tpu.pipeline_mode<synchronous>, transform_indices = @transform_6, window_bounds = array<i64: 4, 8, 32>}, {pipeline_mode = #tpu.pipeline_mode<synchronous>, transform_indices = @transform_7, window_bounds = array<i64: 1, 32>}, {pipeline_mode = #tpu.pipeline_mode<synchronous>, transform_indices = @transform_8, window_bounds = array<i64: 1, 32>}, {pipeline_mode = #tpu.pipeline_mode<synchronous>, transform_indices = @transform_9, window_bounds = array<i64: 1, 32>}, {pipeline_mode = #tpu.pipeline_mode<synchronous>, transform_indices = @transform_10, window_bounds = array<i64: 32, 96>}, {pipeline_mode = #tpu.pipeline_mode<synchronous>, transform_indices = @transform_11, window_bounds = array<i64: 1, 96>}, {pipeline_mode = #tpu.pipeline_mode<synchronous>, transform_indices = @transform_12, window_bounds = array<i64: 4, 8, 32>}, {pipeline_mode = #tpu.pipeline_mode<synchronous>, transform_indices = @transform_13, window_bounds = array<i64: 1, 32>}, {pipeline_mode = #tpu.pipeline_mode<synchronous>, transform_indices = @transform_14, window_bounds = array<i64: 1, 32>}, {pipeline_mode = #tpu.pipeline_mode<synchronous>, transform_indices = @transform_15, window_bounds = array<i64: 1, 32>}, {transform_indices = @transform_16, window_bounds = array<i64: 1, 8, 32>}]} {
    %c0 = arith.constant 0 : index
    %c0_0 = arith.constant 0 : index
    %c0_1 = arith.constant 0 : index
    %0 = vector.load %arg1[%c0, %c0_0, %c0_1] : memref<1x8x32xf32, #tpu.memory_space<vmem>>, vector<1x8x32xf32>
    %1 = vector.shape_cast %0 : vector<1x8x32xf32> to vector<8x32xf32>
    %c0_2 = arith.constant 0 : index
    %c0_3 = arith.constant 0 : index
    %c0_4 = arith.constant 0 : index
    %2 = vector.load %arg2[%c0_2, %c0_3, %c0_4] : memref<1x12x16xf32, #tpu.memory_space<vmem>>, vector<1x12x16xf32>
    %3 = vector.shape_cast %2 : vector<1x12x16xf32> to vector<12x16xf32>
    %c0_5 = arith.constant 0 : index
    %c0_6 = arith.constant 0 : index
    %4 = vector.load %arg3[%c0_5, %c0_6] : memref<32x32xf32, #tpu.memory_space<vmem>>, vector<32x32xf32>
    %cst = arith.constant dense<0.000000e+00> : vector<8x32xf32>
    %5 = tpu.matmul %1, %4, %cst {dimension_numbers = #tpu.dot_dimension_numbers<[1], [0], [0], [1], [0, 0, 1, 1], [], []>} : vector<8x32xf32>, vector<32x32xf32>, vector<8x32xf32> -> vector<8x32xf32>
    %c0_7 = arith.constant 0 : index
    %c0_8 = arith.constant 0 : index
    %6 = vector.load %arg4[%c0_7, %c0_8] : memref<1x32xf32, #tpu.memory_space<vmem>>, vector<1x32xf32>
    %7 = vector.broadcast %6 : vector<1x32xf32> to vector<8x32xf32>
    %8 = arith.addf %5, %7 : vector<8x32xf32>
    %c0_9 = arith.constant 0 : index
    %c0_10 = arith.constant 0 : index
    %9 = vector.load %arg5[%c0_9, %c0_10] : memref<16x64xf32, #tpu.memory_space<vmem>>, vector<16x64xf32>
    %cst_11 = arith.constant dense<0.000000e+00> : vector<12x64xf32>
    %10 = tpu.matmul %3, %9, %cst_11 {dimension_numbers = #tpu.dot_dimension_numbers<[1], [0], [0], [1], [0, 0, 1, 1], [], []>} : vector<12x16xf32>, vector<16x64xf32>, vector<12x64xf32> -> vector<12x64xf32>
    %c0_12 = arith.constant 0 : index
    %c0_13 = arith.constant 0 : index
    %11 = vector.load %arg6[%c0_12, %c0_13] : memref<1x64xf32, #tpu.memory_space<vmem>>, vector<1x64xf32>
    %12 = vector.broadcast %11 : vector<1x64xf32> to vector<12x64xf32>
    %13 = arith.addf %10, %12 : vector<12x64xf32>
    %14 = vector.extract_strided_slice %13 {offsets = [0, 0], sizes = [12, 32], strides = [1, 1]} : vector<12x64xf32> to vector<12x32xf32>
    %15 = vector.extract_strided_slice %13 {offsets = [0, 32], sizes = [12, 32], strides = [1, 1]} : vector<12x64xf32> to vector<12x32xf32>
    %cst_14 = arith.constant 0.000000e+00 : f32
    %16 = vector.broadcast %cst_14 : f32 to vector<8x32xf32>
    %17 = vector.extract_strided_slice %8 {offsets = [0, 0], sizes = [8, 8], strides = [1, 1]} : vector<8x32xf32> to vector<8x8xf32>
    %18 = vector.extract_strided_slice %14 {offsets = [0, 0], sizes = [12, 8], strides = [1, 1]} : vector<12x32xf32> to vector<12x8xf32>
    %19 = vector.extract_strided_slice %15 {offsets = [0, 0], sizes = [12, 8], strides = [1, 1]} : vector<12x32xf32> to vector<12x8xf32>
    %cst_15 = arith.constant dense<0.000000e+00> : vector<8x12xf32>
    %20 = tpu.matmul %17, %18, %cst_15 {dimension_numbers = #tpu.dot_dimension_numbers<[1], [1], [0], [0], [0, 0, 1, 0], [], []>} : vector<8x8xf32>, vector<12x8xf32>, vector<8x12xf32> -> vector<8x12xf32>
    %cst_16 = arith.constant dense<0xFF800000> : vector<8xf32>
    %21 = vector.multi_reduction <maximumf>, %20, %cst_16 [1] : vector<8x12xf32> to vector<8xf32>
    %22 = vector.shape_cast %21 : vector<8xf32> to vector<8x1xf32>
    %23 = vector.broadcast %22 : vector<8x1xf32> to vector<8x12xf32>
    %24 = arith.subf %20, %23 : vector<8x12xf32>
    %25 = math.exp %24 : vector<8x12xf32>
    %cst_17 = arith.constant dense<0.000000e+00> : vector<8xf32>
    %26 = vector.multi_reduction <add>, %25, %cst_17 [1] : vector<8x12xf32> to vector<8xf32>
    %27 = vector.shape_cast %26 : vector<8xf32> to vector<8x1xf32>
    %cst_18 = arith.constant dense<0.000000e+00> : vector<8x8xf32>
    %28 = tpu.matmul %25, %19, %cst_18 {dimension_numbers = #tpu.dot_dimension_numbers<[1], [0], [0], [1], [0, 0, 1, 1], [], []>} : vector<8x12xf32>, vector<12x8xf32>, vector<8x8xf32> -> vector<8x8xf32>
    %29 = vector.broadcast %27 : vector<8x1xf32> to vector<8x8xf32>
    %30 = arith.divf %28, %29 : vector<8x8xf32>
    %c0_19 = arith.constant 0 : index
    %c0_20 = arith.constant 0 : index
    %c0_21 = arith.constant 0 : index
    %31 = vector.load %arg7[%c0_19, %c0_20, %c0_21] : memref<4x8x32xf32, #tpu.memory_space<vmem>>, vector<1x8x32xf32>
    %32 = vector.shape_cast %31 : vector<1x8x32xf32> to vector<8x32xf32>
    %cst_22 = arith.constant dense<0.000000e+00> : vector<8x32xf32>
    %33 = tpu.matmul %30, %32, %cst_22 {dimension_numbers = #tpu.dot_dimension_numbers<[1], [0], [0], [1], [0, 0, 1, 1], [], []>} : vector<8x8xf32>, vector<8x32xf32>, vector<8x32xf32> -> vector<8x32xf32>
    %34 = arith.addf %16, %33 : vector<8x32xf32>
    %35 = vector.extract_strided_slice %8 {offsets = [0, 8], sizes = [8, 8], strides = [1, 1]} : vector<8x32xf32> to vector<8x8xf32>
    %36 = vector.extract_strided_slice %14 {offsets = [0, 8], sizes = [12, 8], strides = [1, 1]} : vector<12x32xf32> to vector<12x8xf32>
    %37 = vector.extract_strided_slice %15 {offsets = [0, 8], sizes = [12, 8], strides = [1, 1]} : vector<12x32xf32> to vector<12x8xf32>
    %cst_23 = arith.constant dense<0.000000e+00> : vector<8x12xf32>
    %38 = tpu.matmul %35, %36, %cst_23 {dimension_numbers = #tpu.dot_dimension_numbers<[1], [1], [0], [0], [0, 0, 1, 0], [], []>} : vector<8x8xf32>, vector<12x8xf32>, vector<8x12xf32> -> vector<8x12xf32>
    %cst_24 = arith.constant dense<0xFF800000> : vector<8xf32>
    %39 = vector.multi_reduction <maximumf>, %38, %cst_24 [1] : vector<8x12xf32> to vector<8xf32>
    %40 = vector.shape_cast %39 : vector<8xf32> to vector<8x1xf32>
    %41 = vector.broadcast %40 : vector<8x1xf32> to vector<8x12xf32>
    %42 = arith.subf %38, %41 : vector<8x12xf32>
    %43 = math.exp %42 : vector<8x12xf32>
    %cst_25 = arith.constant dense<0.000000e+00> : vector<8xf32>
    %44 = vector.multi_reduction <add>, %43, %cst_25 [1] : vector<8x12xf32> to vector<8xf32>
    %45 = vector.shape_cast %44 : vector<8xf32> to vector<8x1xf32>
    %cst_26 = arith.constant dense<0.000000e+00> : vector<8x8xf32>
    %46 = tpu.matmul %43, %37, %cst_26 {dimension_numbers = #tpu.dot_dimension_numbers<[1], [0], [0], [1], [0, 0, 1, 1], [], []>} : vector<8x12xf32>, vector<12x8xf32>, vector<8x8xf32> -> vector<8x8xf32>
    %47 = vector.broadcast %45 : vector<8x1xf32> to vector<8x8xf32>
    %48 = arith.divf %46, %47 : vector<8x8xf32>
    %c1 = arith.constant 1 : index
    %c0_27 = arith.constant 0 : index
    %c0_28 = arith.constant 0 : index
    %49 = vector.load %arg7[%c1, %c0_27, %c0_28] : memref<4x8x32xf32, #tpu.memory_space<vmem>>, vector<1x8x32xf32>
    %50 = vector.shape_cast %49 : vector<1x8x32xf32> to vector<8x32xf32>
    %cst_29 = arith.constant dense<0.000000e+00> : vector<8x32xf32>
    %51 = tpu.matmul %48, %50, %cst_29 {dimension_numbers = #tpu.dot_dimension_numbers<[1], [0], [0], [1], [0, 0, 1, 1], [], []>} : vector<8x8xf32>, vector<8x32xf32>, vector<8x32xf32> -> vector<8x32xf32>
    %52 = arith.addf %34, %51 : vector<8x32xf32>
    %53 = vector.extract_strided_slice %8 {offsets = [0, 16], sizes = [8, 8], strides = [1, 1]} : vector<8x32xf32> to vector<8x8xf32>
    %54 = vector.extract_strided_slice %14 {offsets = [0, 16], sizes = [12, 8], strides = [1, 1]} : vector<12x32xf32> to vector<12x8xf32>
    %55 = vector.extract_strided_slice %15 {offsets = [0, 16], sizes = [12, 8], strides = [1, 1]} : vector<12x32xf32> to vector<12x8xf32>
    %cst_30 = arith.constant dense<0.000000e+00> : vector<8x12xf32>
    %56 = tpu.matmul %53, %54, %cst_30 {dimension_numbers = #tpu.dot_dimension_numbers<[1], [1], [0], [0], [0, 0, 1, 0], [], []>} : vector<8x8xf32>, vector<12x8xf32>, vector<8x12xf32> -> vector<8x12xf32>
    %cst_31 = arith.constant dense<0xFF800000> : vector<8xf32>
    %57 = vector.multi_reduction <maximumf>, %56, %cst_31 [1] : vector<8x12xf32> to vector<8xf32>
    %58 = vector.shape_cast %57 : vector<8xf32> to vector<8x1xf32>
    %59 = vector.broadcast %58 : vector<8x1xf32> to vector<8x12xf32>
    %60 = arith.subf %56, %59 : vector<8x12xf32>
    %61 = math.exp %60 : vector<8x12xf32>
    %cst_32 = arith.constant dense<0.000000e+00> : vector<8xf32>
    %62 = vector.multi_reduction <add>, %61, %cst_32 [1] : vector<8x12xf32> to vector<8xf32>
    %63 = vector.shape_cast %62 : vector<8xf32> to vector<8x1xf32>
    %cst_33 = arith.constant dense<0.000000e+00> : vector<8x8xf32>
    %64 = tpu.matmul %61, %55, %cst_33 {dimension_numbers = #tpu.dot_dimension_numbers<[1], [0], [0], [1], [0, 0, 1, 1], [], []>} : vector<8x12xf32>, vector<12x8xf32>, vector<8x8xf32> -> vector<8x8xf32>
    %65 = vector.broadcast %63 : vector<8x1xf32> to vector<8x8xf32>
    %66 = arith.divf %64, %65 : vector<8x8xf32>
    %c2 = arith.constant 2 : index
    %c0_34 = arith.constant 0 : index
    %c0_35 = arith.constant 0 : index
    %67 = vector.load %arg7[%c2, %c0_34, %c0_35] : memref<4x8x32xf32, #tpu.memory_space<vmem>>, vector<1x8x32xf32>
    %68 = vector.shape_cast %67 : vector<1x8x32xf32> to vector<8x32xf32>
    %cst_36 = arith.constant dense<0.000000e+00> : vector<8x32xf32>
    %69 = tpu.matmul %66, %68, %cst_36 {dimension_numbers = #tpu.dot_dimension_numbers<[1], [0], [0], [1], [0, 0, 1, 1], [], []>} : vector<8x8xf32>, vector<8x32xf32>, vector<8x32xf32> -> vector<8x32xf32>
    %70 = arith.addf %52, %69 : vector<8x32xf32>
    %71 = vector.extract_strided_slice %8 {offsets = [0, 24], sizes = [8, 8], strides = [1, 1]} : vector<8x32xf32> to vector<8x8xf32>
    %72 = vector.extract_strided_slice %14 {offsets = [0, 24], sizes = [12, 8], strides = [1, 1]} : vector<12x32xf32> to vector<12x8xf32>
    %73 = vector.extract_strided_slice %15 {offsets = [0, 24], sizes = [12, 8], strides = [1, 1]} : vector<12x32xf32> to vector<12x8xf32>
    %cst_37 = arith.constant dense<0.000000e+00> : vector<8x12xf32>
    %74 = tpu.matmul %71, %72, %cst_37 {dimension_numbers = #tpu.dot_dimension_numbers<[1], [1], [0], [0], [0, 0, 1, 0], [], []>} : vector<8x8xf32>, vector<12x8xf32>, vector<8x12xf32> -> vector<8x12xf32>
    %cst_38 = arith.constant dense<0xFF800000> : vector<8xf32>
    %75 = vector.multi_reduction <maximumf>, %74, %cst_38 [1] : vector<8x12xf32> to vector<8xf32>
    %76 = vector.shape_cast %75 : vector<8xf32> to vector<8x1xf32>
    %77 = vector.broadcast %76 : vector<8x1xf32> to vector<8x12xf32>
    %78 = arith.subf %74, %77 : vector<8x12xf32>
    %79 = math.exp %78 : vector<8x12xf32>
    %cst_39 = arith.constant dense<0.000000e+00> : vector<8xf32>
    %80 = vector.multi_reduction <add>, %79, %cst_39 [1] : vector<8x12xf32> to vector<8xf32>
    %81 = vector.shape_cast %80 : vector<8xf32> to vector<8x1xf32>
    %cst_40 = arith.constant dense<0.000000e+00> : vector<8x8xf32>
    %82 = tpu.matmul %79, %73, %cst_40 {dimension_numbers = #tpu.dot_dimension_numbers<[1], [0], [0], [1], [0, 0, 1, 1], [], []>} : vector<8x12xf32>, vector<12x8xf32>, vector<8x8xf32> -> vector<8x8xf32>
    %83 = vector.broadcast %81 : vector<8x1xf32> to vector<8x8xf32>
    %84 = arith.divf %82, %83 : vector<8x8xf32>
    %c3 = arith.constant 3 : index
    %c0_41 = arith.constant 0 : index
    %c0_42 = arith.constant 0 : index
    %85 = vector.load %arg7[%c3, %c0_41, %c0_42] : memref<4x8x32xf32, #tpu.memory_space<vmem>>, vector<1x8x32xf32>
    %86 = vector.shape_cast %85 : vector<1x8x32xf32> to vector<8x32xf32>
    %cst_43 = arith.constant dense<0.000000e+00> : vector<8x32xf32>
    %87 = tpu.matmul %84, %86, %cst_43 {dimension_numbers = #tpu.dot_dimension_numbers<[1], [0], [0], [1], [0, 0, 1, 1], [], []>} : vector<8x8xf32>, vector<8x32xf32>, vector<8x32xf32> -> vector<8x32xf32>
    %88 = arith.addf %70, %87 : vector<8x32xf32>
    %c0_44 = arith.constant 0 : index
    %c0_45 = arith.constant 0 : index
    %89 = vector.load %arg8[%c0_44, %c0_45] : memref<1x32xf32, #tpu.memory_space<vmem>>, vector<1x32xf32>
    %90 = vector.broadcast %89 : vector<1x32xf32> to vector<8x32xf32>
    %91 = arith.addf %88, %90 : vector<8x32xf32>
    %92 = arith.addf %91, %1 : vector<8x32xf32>
    %c0_46 = arith.constant 0 : index
    %c0_47 = arith.constant 0 : index
    %93 = vector.load %arg9[%c0_46, %c0_47] : memref<1x32xf32, #tpu.memory_space<vmem>>, vector<1x32xf32>
    %c0_48 = arith.constant 0 : index
    %c0_49 = arith.constant 0 : index
    %94 = vector.load %arg10[%c0_48, %c0_49] : memref<1x32xf32, #tpu.memory_space<vmem>>, vector<1x32xf32>
    %cst_50 = arith.constant dense<0.000000e+00> : vector<8xf32>
    %95 = vector.multi_reduction <add>, %92, %cst_50 [1] : vector<8x32xf32> to vector<8xf32>
    %96 = vector.shape_cast %95 : vector<8xf32> to vector<8x1xf32>
    %cst_51 = arith.constant 3.200000e+01 : f32
    %97 = vector.broadcast %cst_51 : f32 to vector<8x1xf32>
    %98 = arith.divf %96, %97 : vector<8x1xf32>
    %99 = vector.broadcast %98 : vector<8x1xf32> to vector<8x32xf32>
    %100 = arith.subf %92, %99 : vector<8x32xf32>
    %101 = arith.mulf %100, %100 : vector<8x32xf32>
    %cst_52 = arith.constant dense<0.000000e+00> : vector<8xf32>
    %102 = vector.multi_reduction <add>, %101, %cst_52 [1] : vector<8x32xf32> to vector<8xf32>
    %103 = vector.shape_cast %102 : vector<8xf32> to vector<8x1xf32>
    %cst_53 = arith.constant 3.200000e+01 : f32
    %104 = vector.broadcast %cst_53 : f32 to vector<8x1xf32>
    %105 = arith.divf %103, %104 : vector<8x1xf32>
    %106 = vector.broadcast %98 : vector<8x1xf32> to vector<8x32xf32>
    %107 = arith.subf %92, %106 : vector<8x32xf32>
    %cst_54 = arith.constant 9.99999997E-7 : f32
    %108 = vector.broadcast %cst_54 : f32 to vector<8x1xf32>
    %109 = arith.addf %105, %108 : vector<8x1xf32>
    %110 = math.rsqrt %109 : vector<8x1xf32>
    %111 = vector.broadcast %110 : vector<8x1xf32> to vector<8x32xf32>
    %112 = arith.mulf %107, %111 : vector<8x32xf32>
    %113 = vector.broadcast %93 : vector<1x32xf32> to vector<8x32xf32>
    %114 = arith.mulf %112, %113 : vector<8x32xf32>
    %115 = vector.broadcast %94 : vector<1x32xf32> to vector<8x32xf32>
    %116 = arith.addf %114, %115 : vector<8x32xf32>
    %c0_55 = arith.constant 0 : index
    %c0_56 = arith.constant 0 : index
    %117 = vector.load %arg11[%c0_55, %c0_56] : memref<32x96xf32, #tpu.memory_space<vmem>>, vector<32x96xf32>
    %cst_57 = arith.constant dense<0.000000e+00> : vector<8x96xf32>
    %118 = tpu.matmul %116, %117, %cst_57 {dimension_numbers = #tpu.dot_dimension_numbers<[1], [0], [0], [1], [0, 0, 1, 1], [], []>} : vector<8x32xf32>, vector<32x96xf32>, vector<8x96xf32> -> vector<8x96xf32>
    %c0_58 = arith.constant 0 : index
    %c0_59 = arith.constant 0 : index
    %119 = vector.load %arg12[%c0_58, %c0_59] : memref<1x96xf32, #tpu.memory_space<vmem>>, vector<1x96xf32>
    %120 = vector.broadcast %119 : vector<1x96xf32> to vector<8x96xf32>
    %121 = arith.addf %118, %120 : vector<8x96xf32>
    %122 = vector.extract_strided_slice %121 {offsets = [0, 0], sizes = [8, 32], strides = [1, 1]} : vector<8x96xf32> to vector<8x32xf32>
    %123 = vector.extract_strided_slice %121 {offsets = [0, 32], sizes = [8, 32], strides = [1, 1]} : vector<8x96xf32> to vector<8x32xf32>
    %124 = vector.extract_strided_slice %121 {offsets = [0, 64], sizes = [8, 32], strides = [1, 1]} : vector<8x96xf32> to vector<8x32xf32>
    %cst_60 = arith.constant 0.000000e+00 : f32
    %125 = vector.broadcast %cst_60 : f32 to vector<8x32xf32>
    %126 = vector.extract_strided_slice %122 {offsets = [0, 0], sizes = [8, 8], strides = [1, 1]} : vector<8x32xf32> to vector<8x8xf32>
    %127 = vector.extract_strided_slice %123 {offsets = [0, 0], sizes = [8, 8], strides = [1, 1]} : vector<8x32xf32> to vector<8x8xf32>
    %128 = vector.extract_strided_slice %124 {offsets = [0, 0], sizes = [8, 8], strides = [1, 1]} : vector<8x32xf32> to vector<8x8xf32>
    %cst_61 = arith.constant dense<0.000000e+00> : vector<8x8xf32>
    %129 = tpu.matmul %126, %127, %cst_61 {dimension_numbers = #tpu.dot_dimension_numbers<[1], [1], [0], [0], [0, 0, 1, 0], [], []>} : vector<8x8xf32>, vector<8x8xf32>, vector<8x8xf32> -> vector<8x8xf32>
    %cst_62 = arith.constant dense<0xFF800000> : vector<8xf32>
    %130 = vector.multi_reduction <maximumf>, %129, %cst_62 [1] : vector<8x8xf32> to vector<8xf32>
    %131 = vector.shape_cast %130 : vector<8xf32> to vector<8x1xf32>
    %132 = vector.broadcast %131 : vector<8x1xf32> to vector<8x8xf32>
    %133 = arith.subf %129, %132 : vector<8x8xf32>
    %134 = math.exp %133 : vector<8x8xf32>
    %cst_63 = arith.constant dense<0.000000e+00> : vector<8xf32>
    %135 = vector.multi_reduction <add>, %134, %cst_63 [1] : vector<8x8xf32> to vector<8xf32>
    %136 = vector.shape_cast %135 : vector<8xf32> to vector<8x1xf32>
    %cst_64 = arith.constant dense<0.000000e+00> : vector<8x8xf32>
    %137 = tpu.matmul %134, %128, %cst_64 {dimension_numbers = #tpu.dot_dimension_numbers<[1], [0], [0], [1], [0, 0, 1, 1], [], []>} : vector<8x8xf32>, vector<8x8xf32>, vector<8x8xf32> -> vector<8x8xf32>
    %138 = vector.broadcast %136 : vector<8x1xf32> to vector<8x8xf32>
    %139 = arith.divf %137, %138 : vector<8x8xf32>
    %c0_65 = arith.constant 0 : index
    %c0_66 = arith.constant 0 : index
    %c0_67 = arith.constant 0 : index
    %140 = vector.load %arg13[%c0_65, %c0_66, %c0_67] : memref<4x8x32xf32, #tpu.memory_space<vmem>>, vector<1x8x32xf32>
    %141 = vector.shape_cast %140 : vector<1x8x32xf32> to vector<8x32xf32>
    %cst_68 = arith.constant dense<0.000000e+00> : vector<8x32xf32>
    %142 = tpu.matmul %139, %141, %cst_68 {dimension_numbers = #tpu.dot_dimension_numbers<[1], [0], [0], [1], [0, 0, 1, 1], [], []>} : vector<8x8xf32>, vector<8x32xf32>, vector<8x32xf32> -> vector<8x32xf32>
    %143 = arith.addf %125, %142 : vector<8x32xf32>
    %144 = vector.extract_strided_slice %122 {offsets = [0, 8], sizes = [8, 8], strides = [1, 1]} : vector<8x32xf32> to vector<8x8xf32>
    %145 = vector.extract_strided_slice %123 {offsets = [0, 8], sizes = [8, 8], strides = [1, 1]} : vector<8x32xf32> to vector<8x8xf32>
    %146 = vector.extract_strided_slice %124 {offsets = [0, 8], sizes = [8, 8], strides = [1, 1]} : vector<8x32xf32> to vector<8x8xf32>
    %cst_69 = arith.constant dense<0.000000e+00> : vector<8x8xf32>
    %147 = tpu.matmul %144, %145, %cst_69 {dimension_numbers = #tpu.dot_dimension_numbers<[1], [1], [0], [0], [0, 0, 1, 0], [], []>} : vector<8x8xf32>, vector<8x8xf32>, vector<8x8xf32> -> vector<8x8xf32>
    %cst_70 = arith.constant dense<0xFF800000> : vector<8xf32>
    %148 = vector.multi_reduction <maximumf>, %147, %cst_70 [1] : vector<8x8xf32> to vector<8xf32>
    %149 = vector.shape_cast %148 : vector<8xf32> to vector<8x1xf32>
    %150 = vector.broadcast %149 : vector<8x1xf32> to vector<8x8xf32>
    %151 = arith.subf %147, %150 : vector<8x8xf32>
    %152 = math.exp %151 : vector<8x8xf32>
    %cst_71 = arith.constant dense<0.000000e+00> : vector<8xf32>
    %153 = vector.multi_reduction <add>, %152, %cst_71 [1] : vector<8x8xf32> to vector<8xf32>
    %154 = vector.shape_cast %153 : vector<8xf32> to vector<8x1xf32>
    %cst_72 = arith.constant dense<0.000000e+00> : vector<8x8xf32>
    %155 = tpu.matmul %152, %146, %cst_72 {dimension_numbers = #tpu.dot_dimension_numbers<[1], [0], [0], [1], [0, 0, 1, 1], [], []>} : vector<8x8xf32>, vector<8x8xf32>, vector<8x8xf32> -> vector<8x8xf32>
    %156 = vector.broadcast %154 : vector<8x1xf32> to vector<8x8xf32>
    %157 = arith.divf %155, %156 : vector<8x8xf32>
    %c1_73 = arith.constant 1 : index
    %c0_74 = arith.constant 0 : index
    %c0_75 = arith.constant 0 : index
    %158 = vector.load %arg13[%c1_73, %c0_74, %c0_75] : memref<4x8x32xf32, #tpu.memory_space<vmem>>, vector<1x8x32xf32>
    %159 = vector.shape_cast %158 : vector<1x8x32xf32> to vector<8x32xf32>
    %cst_76 = arith.constant dense<0.000000e+00> : vector<8x32xf32>
    %160 = tpu.matmul %157, %159, %cst_76 {dimension_numbers = #tpu.dot_dimension_numbers<[1], [0], [0], [1], [0, 0, 1, 1], [], []>} : vector<8x8xf32>, vector<8x32xf32>, vector<8x32xf32> -> vector<8x32xf32>
    %161 = arith.addf %143, %160 : vector<8x32xf32>
    %162 = vector.extract_strided_slice %122 {offsets = [0, 16], sizes = [8, 8], strides = [1, 1]} : vector<8x32xf32> to vector<8x8xf32>
    %163 = vector.extract_strided_slice %123 {offsets = [0, 16], sizes = [8, 8], strides = [1, 1]} : vector<8x32xf32> to vector<8x8xf32>
    %164 = vector.extract_strided_slice %124 {offsets = [0, 16], sizes = [8, 8], strides = [1, 1]} : vector<8x32xf32> to vector<8x8xf32>
    %cst_77 = arith.constant dense<0.000000e+00> : vector<8x8xf32>
    %165 = tpu.matmul %162, %163, %cst_77 {dimension_numbers = #tpu.dot_dimension_numbers<[1], [1], [0], [0], [0, 0, 1, 0], [], []>} : vector<8x8xf32>, vector<8x8xf32>, vector<8x8xf32> -> vector<8x8xf32>
    %cst_78 = arith.constant dense<0xFF800000> : vector<8xf32>
    %166 = vector.multi_reduction <maximumf>, %165, %cst_78 [1] : vector<8x8xf32> to vector<8xf32>
    %167 = vector.shape_cast %166 : vector<8xf32> to vector<8x1xf32>
    %168 = vector.broadcast %167 : vector<8x1xf32> to vector<8x8xf32>
    %169 = arith.subf %165, %168 : vector<8x8xf32>
    %170 = math.exp %169 : vector<8x8xf32>
    %cst_79 = arith.constant dense<0.000000e+00> : vector<8xf32>
    %171 = vector.multi_reduction <add>, %170, %cst_79 [1] : vector<8x8xf32> to vector<8xf32>
    %172 = vector.shape_cast %171 : vector<8xf32> to vector<8x1xf32>
    %cst_80 = arith.constant dense<0.000000e+00> : vector<8x8xf32>
    %173 = tpu.matmul %170, %164, %cst_80 {dimension_numbers = #tpu.dot_dimension_numbers<[1], [0], [0], [1], [0, 0, 1, 1], [], []>} : vector<8x8xf32>, vector<8x8xf32>, vector<8x8xf32> -> vector<8x8xf32>
    %174 = vector.broadcast %172 : vector<8x1xf32> to vector<8x8xf32>
    %175 = arith.divf %173, %174 : vector<8x8xf32>
    %c2_81 = arith.constant 2 : index
    %c0_82 = arith.constant 0 : index
    %c0_83 = arith.constant 0 : index
    %176 = vector.load %arg13[%c2_81, %c0_82, %c0_83] : memref<4x8x32xf32, #tpu.memory_space<vmem>>, vector<1x8x32xf32>
    %177 = vector.shape_cast %176 : vector<1x8x32xf32> to vector<8x32xf32>
    %cst_84 = arith.constant dense<0.000000e+00> : vector<8x32xf32>
    %178 = tpu.matmul %175, %177, %cst_84 {dimension_numbers = #tpu.dot_dimension_numbers<[1], [0], [0], [1], [0, 0, 1, 1], [], []>} : vector<8x8xf32>, vector<8x32xf32>, vector<8x32xf32> -> vector<8x32xf32>
    %179 = arith.addf %161, %178 : vector<8x32xf32>
    %180 = vector.extract_strided_slice %122 {offsets = [0, 24], sizes = [8, 8], strides = [1, 1]} : vector<8x32xf32> to vector<8x8xf32>
    %181 = vector.extract_strided_slice %123 {offsets = [0, 24], sizes = [8, 8], strides = [1, 1]} : vector<8x32xf32> to vector<8x8xf32>
    %182 = vector.extract_strided_slice %124 {offsets = [0, 24], sizes = [8, 8], strides = [1, 1]} : vector<8x32xf32> to vector<8x8xf32>
    %cst_85 = arith.constant dense<0.000000e+00> : vector<8x8xf32>
    %183 = tpu.matmul %180, %181, %cst_85 {dimension_numbers = #tpu.dot_dimension_numbers<[1], [1], [0], [0], [0, 0, 1, 0], [], []>} : vector<8x8xf32>, vector<8x8xf32>, vector<8x8xf32> -> vector<8x8xf32>
    %cst_86 = arith.constant dense<0xFF800000> : vector<8xf32>
    %184 = vector.multi_reduction <maximumf>, %183, %cst_86 [1] : vector<8x8xf32> to vector<8xf32>
    %185 = vector.shape_cast %184 : vector<8xf32> to vector<8x1xf32>
    %186 = vector.broadcast %185 : vector<8x1xf32> to vector<8x8xf32>
    %187 = arith.subf %183, %186 : vector<8x8xf32>
    %188 = math.exp %187 : vector<8x8xf32>
    %cst_87 = arith.constant dense<0.000000e+00> : vector<8xf32>
    %189 = vector.multi_reduction <add>, %188, %cst_87 [1] : vector<8x8xf32> to vector<8xf32>
    %190 = vector.shape_cast %189 : vector<8xf32> to vector<8x1xf32>
    %cst_88 = arith.constant dense<0.000000e+00> : vector<8x8xf32>
    %191 = tpu.matmul %188, %182, %cst_88 {dimension_numbers = #tpu.dot_dimension_numbers<[1], [0], [0], [1], [0, 0, 1, 1], [], []>} : vector<8x8xf32>, vector<8x8xf32>, vector<8x8xf32> -> vector<8x8xf32>
    %192 = vector.broadcast %190 : vector<8x1xf32> to vector<8x8xf32>
    %193 = arith.divf %191, %192 : vector<8x8xf32>
    %c3_89 = arith.constant 3 : index
    %c0_90 = arith.constant 0 : index
    %c0_91 = arith.constant 0 : index
    %194 = vector.load %arg13[%c3_89, %c0_90, %c0_91] : memref<4x8x32xf32, #tpu.memory_space<vmem>>, vector<1x8x32xf32>
    %195 = vector.shape_cast %194 : vector<1x8x32xf32> to vector<8x32xf32>
    %cst_92 = arith.constant dense<0.000000e+00> : vector<8x32xf32>
    %196 = tpu.matmul %193, %195, %cst_92 {dimension_numbers = #tpu.dot_dimension_numbers<[1], [0], [0], [1], [0, 0, 1, 1], [], []>} : vector<8x8xf32>, vector<8x32xf32>, vector<8x32xf32> -> vector<8x32xf32>
    %197 = arith.addf %179, %196 : vector<8x32xf32>
    %c0_93 = arith.constant 0 : index
    %c0_94 = arith.constant 0 : index
    %198 = vector.load %arg14[%c0_93, %c0_94] : memref<1x32xf32, #tpu.memory_space<vmem>>, vector<1x32xf32>
    %199 = vector.broadcast %198 : vector<1x32xf32> to vector<8x32xf32>
    %200 = arith.addf %197, %199 : vector<8x32xf32>
    %201 = arith.addf %200, %116 : vector<8x32xf32>
    %c0_95 = arith.constant 0 : index
    %c0_96 = arith.constant 0 : index
    %202 = vector.load %arg15[%c0_95, %c0_96] : memref<1x32xf32, #tpu.memory_space<vmem>>, vector<1x32xf32>
    %c0_97 = arith.constant 0 : index
    %c0_98 = arith.constant 0 : index
    %203 = vector.load %arg16[%c0_97, %c0_98] : memref<1x32xf32, #tpu.memory_space<vmem>>, vector<1x32xf32>
    %cst_99 = arith.constant dense<0.000000e+00> : vector<8xf32>
    %204 = vector.multi_reduction <add>, %201, %cst_99 [1] : vector<8x32xf32> to vector<8xf32>
    %205 = vector.shape_cast %204 : vector<8xf32> to vector<8x1xf32>
    %cst_100 = arith.constant 3.200000e+01 : f32
    %206 = vector.broadcast %cst_100 : f32 to vector<8x1xf32>
    %207 = arith.divf %205, %206 : vector<8x1xf32>
    %208 = vector.broadcast %207 : vector<8x1xf32> to vector<8x32xf32>
    %209 = arith.subf %201, %208 : vector<8x32xf32>
    %210 = arith.mulf %209, %209 : vector<8x32xf32>
    %cst_101 = arith.constant dense<0.000000e+00> : vector<8xf32>
    %211 = vector.multi_reduction <add>, %210, %cst_101 [1] : vector<8x32xf32> to vector<8xf32>
    %212 = vector.shape_cast %211 : vector<8xf32> to vector<8x1xf32>
    %cst_102 = arith.constant 3.200000e+01 : f32
    %213 = vector.broadcast %cst_102 : f32 to vector<8x1xf32>
    %214 = arith.divf %212, %213 : vector<8x1xf32>
    %215 = vector.broadcast %207 : vector<8x1xf32> to vector<8x32xf32>
    %216 = arith.subf %201, %215 : vector<8x32xf32>
    %cst_103 = arith.constant 9.99999997E-7 : f32
    %217 = vector.broadcast %cst_103 : f32 to vector<8x1xf32>
    %218 = arith.addf %214, %217 : vector<8x1xf32>
    %219 = math.rsqrt %218 : vector<8x1xf32>
    %220 = vector.broadcast %219 : vector<8x1xf32> to vector<8x32xf32>
    %221 = arith.mulf %216, %220 : vector<8x32xf32>
    %222 = vector.broadcast %202 : vector<1x32xf32> to vector<8x32xf32>
    %223 = arith.mulf %221, %222 : vector<8x32xf32>
    %224 = vector.broadcast %203 : vector<1x32xf32> to vector<8x32xf32>
    %225 = arith.addf %223, %224 : vector<8x32xf32>
    %c0_104 = arith.constant 0 : index
    %c0_105 = arith.constant 0 : index
    %c0_106 = arith.constant 0 : index
    %226 = vector.load %arg17[%c0_104, %c0_105, %c0_106] : memref<1x8x32xf32, #tpu.memory_space<vmem>>, vector<1x8x32xf32>
    %227 = vector.shape_cast %226 : vector<1x8x32xf32> to vector<8x32xf32>
    %228 = vector.shape_cast %225 : vector<8x32xf32> to vector<1x8x32xf32>
    tpu.vector_store %arg17[%c0_104, %c0_105, %c0_106], %228 {strides = array<i32>} : memref<1x8x32xf32, #tpu.memory_space<vmem>>, vector<1x8x32xf32>,
    return
  }
  func.func @transform_0(%arg0: i32) -> (i32, i32, i32) {
    %c0_i32 = arith.constant 0 : i32
    %c0_i32_0 = arith.constant 0 : i32
    %c0_i32_1 = arith.constant 0 : i32
    return %arg0, %c0_i32, %c0_i32_0 : i32, i32, i32
  }
  func.func @transform_1(%arg0: i32) -> (i32, i32, i32) {
    %c0_i32 = arith.constant 0 : i32
    %c0_i32_0 = arith.constant 0 : i32
    %c0_i32_1 = arith.constant 0 : i32
    return %arg0, %c0_i32, %c0_i32_0 : i32, i32, i32
  }
  func.func @transform_2(%arg0: i32) -> (i32, i32) {
    %c0_i32 = arith.constant 0 : i32
    %c0_i32_0 = arith.constant 0 : i32
    %c0_i32_1 = arith.constant 0 : i32
    return %c0_i32, %c0_i32_0 : i32, i32
  }
  func.func @transform_3(%arg0: i32) -> (i32, i32) {
    %c0_i32 = arith.constant 0 : i32
    %c0_i32_0 = arith.constant 0 : i32
    %c0_i32_1 = arith.constant 0 : i32
    return %c0_i32, %c0_i32_0 : i32, i32
  }
  func.func @transform_4(%arg0: i32) -> (i32, i32) {
    %c0_i32 = arith.constant 0 : i32
    %c0_i32_0 = arith.constant 0 : i32
    %c0_i32_1 = arith.constant 0 : i32
    return %c0_i32, %c0_i32_0 : i32, i32
  }
  func.func @transform_5(%arg0: i32) -> (i32, i32) {
    %c0_i32 = arith.constant 0 : i32
    %c0_i32_0 = arith.constant 0 : i32
    %c0_i32_1 = arith.constant 0 : i32
    return %c0_i32, %c0_i32_0 : i32, i32
  }
  func.func @transform_6(%arg0: i32) -> (i32, i32, i32) {
    %c0_i32 = arith.constant 0 : i32
    %c0_i32_0 = arith.constant 0 : i32
    %c0_i32_1 = arith.constant 0 : i32
    %c0_i32_2 = arith.constant 0 : i32
    return %c0_i32, %c0_i32_0, %c0_i32_1 : i32, i32, i32
  }
  func.func @transform_7(%arg0: i32) -> (i32, i32) {
    %c0_i32 = arith.constant 0 : i32
    %c0_i32_0 = arith.constant 0 : i32
    %c0_i32_1 = arith.constant 0 : i32
    return %c0_i32, %c0_i32_0 : i32, i32
  }
  func.func @transform_8(%arg0: i32) -> (i32, i32) {
    %c0_i32 = arith.constant 0 : i32
    %c0_i32_0 = arith.constant 0 : i32
    %c0_i32_1 = arith.constant 0 : i32
    return %c0_i32, %c0_i32_0 : i32, i32
  }
  func.func @transform_9(%arg0: i32) -> (i32, i32) {
    %c0_i32 = arith.constant 0 : i32
    %c0_i32_0 = arith.constant 0 : i32
    %c0_i32_1 = arith.constant 0 : i32
    return %c0_i32, %c0_i32_0 : i32, i32
  }
  func.func @transform_10(%arg0: i32) -> (i32, i32) {
    %c0_i32 = arith.constant 0 : i32
    %c0_i32_0 = arith.constant 0 : i32
    %c0_i32_1 = arith.constant 0 : i32
    return %c0_i32, %c0_i32_0 : i32, i32
  }
  func.func @transform_11(%arg0: i32) -> (i32, i32) {
    %c0_i32 = arith.constant 0 : i32
    %c0_i32_0 = arith.constant 0 : i32
    %c0_i32_1 = arith.constant 0 : i32
    return %c0_i32, %c0_i32_0 : i32, i32
  }
  func.func @transform_12(%arg0: i32) -> (i32, i32, i32) {
    %c0_i32 = arith.constant 0 : i32
    %c0_i32_0 = arith.constant 0 : i32
    %c0_i32_1 = arith.constant 0 : i32
    %c0_i32_2 = arith.constant 0 : i32
    return %c0_i32, %c0_i32_0, %c0_i32_1 : i32, i32, i32
  }
  func.func @transform_13(%arg0: i32) -> (i32, i32) {
    %c0_i32 = arith.constant 0 : i32
    %c0_i32_0 = arith.constant 0 : i32
    %c0_i32_1 = arith.constant 0 : i32
    return %c0_i32, %c0_i32_0 : i32, i32
  }
  func.func @transform_14(%arg0: i32) -> (i32, i32) {
    %c0_i32 = arith.constant 0 : i32
    %c0_i32_0 = arith.constant 0 : i32
    %c0_i32_1 = arith.constant 0 : i32
    return %c0_i32, %c0_i32_0 : i32, i32
  }
  func.func @transform_15(%arg0: i32) -> (i32, i32) {
    %c0_i32 = arith.constant 0 : i32
    %c0_i32_0 = arith.constant 0 : i32
    %c0_i32_1 = arith.constant 0 : i32
    return %c0_i32, %c0_i32_0 : i32, i32
  }
  func.func @transform_16(%arg0: i32) -> (i32, i32, i32) {
    %c0_i32 = arith.constant 0 : i32
    %c0_i32_0 = arith.constant 0 : i32
    %c0_i32_1 = arith.constant 0 : i32
    return %arg0, %c0_i32, %c0_i32_0 : i32, i32, i32
  }
}

</mosaic_0001>

<bundles_post_ra>
// kernel: tpu_custom_call.1
= control target key start
LH: loop header
LB: loop body
LE: loop exit
PB: predicated region body
PF: predicated region fallthrough
CT: control target
= control target key end

     0   :  { %s4720_s0 = inlined_call_operand.hbm [shape: f32[2,8,32], index: 0, kind: input, shape index: {}]   ;;  %s4721_s1 = inlined_call_operand.vmem [shape: f32[2,12,16], index: 1, kind: input, shape index: {}]   ;;  %s4722_s2 = inlined_call_operand.vmem [shape: f32[32,32], index: 2, kind: input, shape index: {}]   ;;  %s4723_s3 = inlined_call_operand.vmem [shape: f32[1,32], index: 3, kind: input, shape index: {}]   ;;  %s4724_s4 = inlined_call_operand.hbm [shape: f32[16,64], index: 4, kind: input, shape index: {}]   ;;  %s4725_s5 = inlined_call_operand.hbm [shape: f32[1,64], index: 5, kind: input, shape index: {}]   ;;  %s4726_s6 = inlined_call_operand.vmem [shape: f32[4,8,32], index: 6, kind: input, shape index: {}]   ;;  %s4727_s7 = inlined_call_operand.hbm [shape: f32[1,32], index: 7, kind: input, shape index: {}]   ;;  %s4728_s8 = inlined_call_operand.hbm [shape: f32[1,32], index: 8, kind: input, shape index: {}]   ;;  %s4729_s9 = inlined_call_operand.hbm [shape: f32[1,32], index: 9, kind: input, shape index: {}]   ;;  %s4730_s10 = inlined_call_operand.hbm [shape: f32[32,96], index: 10, kind: input, shape index: {}]   ;;  %s4731_s11 = inlined_call_operand.hbm [shape: f32[1,96], index: 11, kind: input, shape index: {}]   ;;  %s4732_s12 = inlined_call_operand.vmem [shape: f32[4,8,32], index: 12, kind: input, shape index: {}]   ;;  %s4733_s13 = inlined_call_operand.vmem [shape: f32[1,32], index: 13, kind: input, shape index: {}]   ;;  %s4734_s14 = inlined_call_operand.vmem [shape: f32[1,32], index: 14, kind: input, shape index: {}]   ;;  %s4735_s15 = inlined_call_operand.vmem [shape: f32[1,32], index: 15, kind: input, shape index: {}]   ;;  %s4736_s16 = inlined_call_operand.hbm [shape: f32[2,8,32], index: 16, kind: output, shape index: {}]  }
   0x1   :  { %4745 = sst [smem:[#allocation23_spill]] %s4720_s0 }
   0x2   :  { %4746 = sst [smem:[#allocation24_spill]] %s4721_s1 }
   0x3   :  { %4747 = sst [smem:[#allocation25_spill]] %s4722_s2 }
   0x4   :  { %4748 = sst [smem:[#allocation26_spill]] %s4723_s3 }
   0x5   :  { %4749 = sst [smem:[#allocation27_spill]] %s4724_s4 }
   0x6   :  { %4750 = sst [smem:[#allocation28_spill]] %s4725_s5 }
   0x7   :  { %4751 = sst [smem:[#allocation29_spill]] %s4726_s6 }
   0x8   :  { %4752 = sst [smem:[#allocation30_spill]] %s4727_s7 }
   0x9   :  { %4753 = sst [smem:[#allocation31_spill]] %s4732_s12 }
   0xa   :  { %4754 = sst [smem:[#allocation32_spill]] %s4733_s13 }
   0xb   :  { %4755 = sst [smem:[#allocation33_spill]] %s4734_s14 }
   0xc   :  { %4756 = sst [smem:[#allocation34_spill]] %s4735_s15 }
   0xd   :  { %4757 = sst [smem:[#allocation35_spill]] %s4736_s16 }
   0xe   :  { %21 = vsyncpa [#allocation3], 0 }
   0xf   :  { %23 = vsyncpa [#allocation3 + $0x1], 0 }
  0x10   :  { %24 = vsyncpa [#allocation6], 0 }
  0x11   :  { %25 = vsyncpa [#allocation9], 0 }
  0x12   :  { %26 = vsyncpa [#allocation12], 0 }
  0x13   :  { %27 = vsyncpa [#allocation15], 0 }
  0x14   :  { %28 = vsyncpa [#allocation4], 0 }
  0x15   :  { %30 = vsyncpa [#allocation4 + $0x1], 0  ;;  %s4103_s21 = smov 0   ;;  %s4105_s22 = smov 0  }
  0x16   :  { %s4107_s23 = smov 0   ;;  %s4109_s24 = smov 0  }
  0x17 LB: > { %s3992_s25 = smov [#allocation5]   ;;  %s4124_s27 = sadd.s32 4294967295, %s3990_s24   ;;  %s3990_s24 = sphi %s4109_s24, %s4799_s24   ;;  %s3986_s23 = sphi %s4107_s23, %s4798_s23   ;;  %s3982_s22 = sphi %s4105_s22, %s4797_s22   ;;  %s3978_s21 = sphi %s4103_s21, %s4796_s21  }
  0x18   : > { %s431_s26 = sshll.u32 %s3992_s25, 4  ;;  %p3107_p0 = scmp.ge.s32.totalorder %s3990_s24, 1  ;;  %s4129_s26 = int_to_ptr.vmem [resolvable:$true] %s431_s26 }
  0x19   : > { %p4742_p1 = scmp.eq.s32.totalorder %s4124_s27, 0  ;;  %p413_p2 = scmp.lt.s32.totalorder %s3990_s24, 3 }
  0x1a   : > { %s3993_s29 = smov [#allocation8]   ;;  %s3994_s17 = smov [#allocation11]  }
  0x1b   : > { %p4131_p3 = pnand %p3107_p0, %p413_p2  ;;  %s459_s30 = sshll.u32 %s3993_s29, 4  ;;  %s4144_s30 = int_to_ptr.vmem [resolvable:$true] %s459_s30 }
  0x1c   : > { %s481_s18 = sshll.u32 %s3994_s17, 4  ;;  %s4760_s4 = sld [smem:[#allocation27_spill]]  ;;  %s4146_s18 = int_to_ptr.vmem [resolvable:$true] %s481_s18 }
  0x1d   : > { %s4758_s28 = scalar_select %p4131_p3, 1, 0 }
  0x1e   : > { %p3509_p5 = pneg %p4131_p3 }
  0x20   : > { %p4140_p6 = pnand %p3509_p5, %p4742_p1 }
  0x22   : > { %s3682_s25 = scalar_lea.hbm %s4760_s4, 256  ;;  %p4156_p8 = pneg %p4140_p6 }
  0x23   : > { %p3683_p7 = scmp.ne.s32.totalorder %s4760_s4, %s3682_s25  ;;  %p3689_p11 = scmp.lt.u32.totalorder %s3682_s25, %s4760_s4 }
  0x25   : > { %p3685_p9 = pnand %p4156_p8, %p3683_p7 }
  0x27   : > { %p3686_p10 = pneg %p3685_p9 }
  0x29   : > { %p3691_p12 = pnand %p3689_p11, %p3686_p10 }
  0x2b   : > { %3694 = shalt.err (!%p3691_p12)
}
  0x2c   : > { %s3695_s15 = scalar_lea.vmem %s4129_s26, 256  ;;  %p3703_p5 = scmp.lt.s32.totalorder %s4129_s26, %s4129_s26 }
  0x2d   : > { %p3696_p13 = scmp.ne.s32.totalorder %s4129_s26, %s3695_s15  ;;  %p3704_p4 = scmp.lt.s32.totalorder %s3695_s15, %s3695_s15 }
  0x2f   : > { %p3698_p0 = pnand %p3696_p13, %p4156_p8  ;;  %p3705_p7 = por %p3704_p4, %p3703_p5 }
  0x31   : > { %p3699_p2 = pneg %p3698_p0 }
  0x33   : > { %p3706_p9 = pnand %p3705_p7, %p3699_p2 }
  0x35   : > { %3709 = shalt.err (!%p3706_p9)
}
  0x36   : > { %s4741_s16 = smov 128   ;;  %s3996_s14 = smov 8  }
  0x37   : > { %3512 = dma.hbm_to_vmem [thread:$0]  (!%p4140_p6), %s4760_s4, 256, %s4129_s26, [#allocation6], %s4741_s16, %s4741_s16, %s3996_s14  }
  0x38   : > { %s4762_s7 = sld [smem:[#allocation30_spill]] }
  0x3e   : > { %s3710_s15 = scalar_lea.hbm %s4762_s7, 16 }
  0x3f   : > { %p3711_p4 = scmp.ne.s32.totalorder %s4762_s7, %s3710_s15  ;;  %p3717_p12 = scmp.lt.u32.totalorder %s3710_s15, %s4762_s7 }
  0x41   : > { %p3713_p10 = pnand %p3711_p4, %p4156_p8 }
  0x43   : > { %p3714_p11 = pneg %p3713_p10 }
  0x45   : > { %p3719_p13 = pnand %p3717_p12, %p3714_p11 }
  0x47   : > { %3722 = shalt.err (!%p3719_p13)
}
  0x48   : > { %s3723_s26 = scalar_lea.vmem %s4144_s30, 16  ;;  %s3730_s12 = scalar_lea.vmem %s4144_s30, 32 }
  0x49   : > { %p3724_p0 = scmp.ne.s32.totalorder %s4144_s30, %s3723_s26  ;;  %p3731_p7 = scmp.lt.s32.totalorder %s4144_s30, %s4144_s30 }
  0x4a   : > { %p3732_p9 = scmp.lt.s32.totalorder %s3730_s12, %s3723_s26 }
  0x4b   : > { %p3726_p2 = pnand %p3724_p0, %p4156_p8 }
  0x4c   : > { %p3733_p4 = por %p3732_p9, %p3731_p7 }
  0x4d   : > { %p3727_p5 = pneg %p3726_p2 }
  0x4f   : > { %p3734_p10 = pnand %p3733_p4, %p3727_p5 }
  0x51   : > { %3737 = shalt.err (!%p3734_p10)
}
  0x52   : > { %3518 = dma.hbm_to_vmem [thread:$0]  (!%p4140_p6), %s4762_s7, 16, %s4144_s30, [#allocation9]  }
  0x53   : > { %s3738_s20 = scalar_lea.hbm %s4729_s9, 16 }
  0x54   : > { %p3739_p11 = scmp.ne.s32.totalorder %s4729_s9, %s3738_s20  ;;  %p3745_p0 = scmp.lt.u32.totalorder %s3738_s20, %s4729_s9 }
  0x56   : > { %p3741_p12 = pnand %p3739_p11, %p4156_p8 }
  0x58   : > { %p3742_p13 = pneg %p3741_p12 }
  0x5a   : > { %p3747_p2 = pnand %p3745_p0, %p3742_p13 }
  0x5c   : > { %3750 = shalt.err (!%p3747_p2)
}
  0x5d   : > { %s3751_s30 = scalar_lea.vmem %s4146_s18, 16  ;;  %s3758_s12 = scalar_lea.vmem %s4146_s18, 32 }
  0x5e   : > { %p3752_p5 = scmp.ne.s32.totalorder %s4146_s18, %s3751_s30  ;;  %p3759_p4 = scmp.lt.s32.totalorder %s4146_s18, %s4146_s18 }
  0x5f   : > { %p3760_p10 = scmp.lt.s32.totalorder %s3758_s12, %s3751_s30 }
  0x60   : > { %p3754_p7 = pnand %p3752_p5, %p4156_p8 }
  0x61   : > { %p3761_p11 = por %p3760_p10, %p3759_p4 }
  0x62   : > { %p3755_p9 = pneg %p3754_p7 }
  0x64   : > { %p3762_p12 = pnand %p3761_p11, %p3755_p9 }
  0x66   : > { %3765 = shalt.err (!%p3762_p12)
}
  0x67   : > { %3524 = dma.hbm_to_vmem [thread:$0]  (!%p4140_p6), %s4729_s9, 16, %s4146_s18, [#allocation12]  }
  0x68   : > { %s3997_s13 = smov [#allocation7]   ;;  %s3998_s20 = smov [#allocation10]  }
  0x69   : > { %s445_s19 = sshll.u32 %s3997_s13, 4  ;;  %s470_s25 = sshll.u32 %s3998_s20, 4  ;;  %s446_s19 = int_to_ptr.vmem [resolvable:$true] %s445_s19  ;;  %s471_s25 = int_to_ptr.vmem [resolvable:$true] %s470_s25 }
  0x6a   : > { %s4763_s5 = sld [smem:[#allocation28_spill]] }
  0x70   : > { %s3766_s26 = scalar_lea.hbm %s4763_s5, 16 }
  0x71   : > { %p3767_p13 = scmp.ne.s32.totalorder %s4763_s5, %s3766_s26  ;;  %p3773_p5 = scmp.lt.u32.totalorder %s3766_s26, %s4763_s5 }
  0x73   : > { %p3769_p0 = pnand %p3767_p13, %p4156_p8 }
  0x75   : > { %p3770_p2 = pneg %p3769_p0 }
  0x77   : > { %p3775_p7 = pnand %p3773_p5, %p3770_p2 }
  0x79   : > { %3778 = shalt.err (!%p3775_p7)
}
  0x7a   : > { %s3779_s18 = scalar_lea.vmem %s446_s19, 16  ;;  %s3786_s6 = scalar_lea.vmem %s446_s19, 32 }
  0x7b   : > { %p3780_p9 = scmp.ne.s32.totalorder %s446_s19, %s3779_s18  ;;  %p3787_p11 = scmp.lt.s32.totalorder %s446_s19, %s446_s19 }
  0x7c   : > { %p3788_p12 = scmp.lt.s32.totalorder %s3786_s6, %s3779_s18 }
  0x7d   : > { %p3782_p4 = pnand %p3780_p9, %p4156_p8 }
  0x7e   : > { %p3789_p1 = por %p3788_p12, %p3787_p11 }
  0x7f   : > { %p3783_p10 = pneg %p3782_p4 }
  0x81   : > { %p3790_p3 = pnand %p3789_p1, %p3783_p10 }
  0x83   : > { %3793 = shalt.err (!%p3790_p3)
}
  0x84   : > { %3515 = dma.hbm_to_vmem [thread:$0]  (!%p4140_p6), %s4763_s5, 16, %s446_s19, [#allocation6]  }
  0x85   : > { %s3794_s15 = scalar_lea.hbm %s4728_s8, 16 }
  0x86   : > { %p3795_p13 = scmp.ne.s32.totalorder %s4728_s8, %s3794_s15  ;;  %p3801_p3 = scmp.lt.u32.totalorder %s3794_s15, %s4728_s8 }
  0x88   : > { %p3797_p0 = pnand %p3795_p13, %p4156_p8 }
  0x8a   : > { %p3798_p1 = pneg %p3797_p0 }
  0x8c   : > { %p3803_p2 = pnand %p3801_p3, %p3798_p1 }
  0x8e   : > { %3806 = shalt.err (!%p3803_p2)
}
  0x8f   : > { %s3807_s18 = scalar_lea.vmem %s471_s25, 16  ;;  %s3814_s19 = scalar_lea.vmem %s471_s25, 32 }
  0x90   : > { %p3808_p5 = scmp.ne.s32.totalorder %s471_s25, %s3807_s18  ;;  %p3815_p4 = scmp.lt.s32.totalorder %s471_s25, %s471_s25 }
  0x91   : > { %p3816_p10 = scmp.lt.s32.totalorder %s3814_s19, %s3807_s18 }
  0x92   : > { %p3810_p7 = pnand %p3808_p5, %p4156_p8 }
  0x93   : > { %p3817_p11 = por %p3816_p10, %p3815_p4 }
  0x94   : > { %p3811_p9 = pneg %p3810_p7 }
  0x96   : > { %p3818_p12 = pnand %p3817_p11, %p3811_p9 }
  0x98   : > { %3821 = shalt.err (!%p3818_p12)
}
  0x99   : > { %3521 = dma.hbm_to_vmem [thread:$0]  (!%p4140_p6), %s4728_s8, 16, %s471_s25, [#allocation9]  }
  0x9a   : > { %s3999_s20 = smov [#allocation13]   ;;  %s4000_s17 = smov [#allocation14]  }
  0x9b   : > { %s491_s16 = sshll.u32 %s3999_s20, 4  ;;  %s505_s15 = sshll.u32 %s4000_s17, 4  ;;  %s492_s16 = int_to_ptr.vmem [resolvable:$true] %s491_s16  ;;  %s506_s15 = int_to_ptr.vmem [resolvable:$true] %s505_s15 }
  0x9c   : > { %s3822_s12 = scalar_lea.hbm %s4730_s10, 512 }
  0x9d   : > { %p3823_p13 = scmp.ne.s32.totalorder %s4730_s10, %s3822_s12  ;;  %p3829_p3 = scmp.lt.u32.totalorder %s3822_s12, %s4730_s10 }
  0x9f   : > { %p3825_p0 = pnand %p3823_p13, %p4156_p8 }
  0xa1   : > { %p3826_p1 = pneg %p3825_p0 }
  0xa3   : > { %p3831_p2 = pnand %p3829_p3, %p3826_p1 }
  0xa5   : > { %3834 = shalt.err (!%p3831_p2)
}
  0xa6   : > { %s3835_s25 = scalar_lea.vmem %s492_s16, 512  ;;  %p3843_p4 = scmp.lt.s32.totalorder %s492_s16, %s492_s16 }
  0xa7   : > { %p3836_p5 = scmp.ne.s32.totalorder %s492_s16, %s3835_s25  ;;  %p3844_p10 = scmp.lt.s32.totalorder %s3835_s25, %s3835_s25 }
  0xa9   : > { %p3838_p7 = pnand %p3836_p5, %p4156_p8  ;;  %p3845_p11 = por %p3844_p10, %p3843_p4 }
  0xab   : > { %p3839_p9 = pneg %p3838_p7 }
  0xad   : > { %p3846_p12 = pnand %p3845_p11, %p3839_p9 }
  0xaf   : > { %3849 = shalt.err (!%p3846_p12)
}
  0xb0   : > { %s4764_s13 = smov 128   ;;  %s3850_s12 = scalar_lea.hbm %s4731_s11, 16 }
  0xb1   : > { %3527 = dma.hbm_to_vmem [thread:$0]  (!%p4140_p6), %s4730_s10, 512, %s492_s16, [#allocation12], %s4764_s13, %s4764_s13, %s3996_s14  }
  0xb2   : > { %p3851_p13 = scmp.ne.s32.totalorder %s4731_s11, %s3850_s12  ;;  %p3857_p3 = scmp.lt.u32.totalorder %s3850_s12, %s4731_s11 }
  0xb4   : > { %p3853_p0 = pnand %p3851_p13, %p4156_p8 }
  0xb6   : > { %p3854_p1 = pneg %p3853_p0 }
  0xb8   : > { %p3859_p2 = pnand %p3857_p3, %p3854_p1 }
  0xba   : > { %3862 = shalt.err (!%p3859_p2)
}
  0xbb   : > { %s3863_s25 = scalar_lea.vmem %s506_s15, 16  ;;  %s3870_s14 = scalar_lea.vmem %s506_s15, 32 }
  0xbc   : > { %p3864_p5 = scmp.ne.s32.totalorder %s506_s15, %s3863_s25  ;;  %p3871_p4 = scmp.lt.s32.totalorder %s506_s15, %s506_s15 }
  0xbd   : > { %p3872_p10 = scmp.lt.s32.totalorder %s3870_s14, %s3863_s25 }
  0xbe   : > { %p3866_p7 = pnand %p3864_p5, %p4156_p8 }
  0xbf   : > { %p3873_p11 = por %p3872_p10, %p3871_p4 }
  0xc0   : > { %p3867_p9 = pneg %p3866_p7 }
  0xc2   : > { %p3874_p12 = pnand %p3873_p11, %p3867_p9 }
  0xc4   : > { %3877 = shalt.err (!%p3874_p12)
}
  0xc5   : > { %3530 = dma.hbm_to_vmem [thread:$0]  (!%p4140_p6), %s4731_s11, 16, %s506_s15, [#allocation15]  }
  0xc6   : > { %s3106_s29 = sadd.s32 4294967294, %s3990_s24   ;;  %s4305_s0 = sadd.s32 1, %s3990_s24  }
  0xc7   : > { %s43_s20 = sadd.s32 1, %s3986_s23  ;;  %s40_s17 = ssub.s32 %s3990_s24, %s4305_s0 }
  0xc8   : > { %p50_p8 = scmp.ne.s32.totalorder %s3986_s23, %s3982_s22  ;;  %p41_p13 = scmp.eq.s32.totalorder %s40_s17, 0 }
  0xc9   : > { %p51_p0 = scmp.eq.s32.totalorder %s3990_s24, 0  ;;  %p56_p1 = scmp.ne.s32.totalorder %s3982_s22, %s3978_s21 }
  0xca   : > { %p400_p3 = scmp.eq.s32.totalorder %s4124_s27, 1  ;;  %p4765_p5 = scmp.eq.s32.totalorder %s4124_s27, 0 }
  0xcb   : > { %s4317_s26 = scalar_select %p41_p13, %s3986_s23, %s43_s20  }
  0xcc   : > { %p52_p2 = por %p51_p0, %p50_p8  ;;  %p4321_p7 = por %p4765_p5, %p56_p1 }
  0xcd   : > { %p4325_p6 = por %p400_p3, %p50_p8  ;;  %p406_p9 = scmp.eq.s32.totalorder %s3106_s29, 1 }
  0xce   : > { %p3546_p4 = scmp.lt.s32.totalorder %s3990_s24, 2  ;;  %s528_s12 = sand.u32 1, %s3986_s23  }
  0xcf   : > { %s4767_s15 = scalar_select %p4325_p6, 1, 0 }
  0xd0   : > { %p4331_p10 = por %p406_p9, %p56_p1  ;;  %s3116_s18 = sshll.u32 %s528_s12, 3 }
  0xd1   : > { %s3117_s19 = sshll.u32 %s3990_s24, 7  ;;  %s4769_s14 = sld [smem:[#allocation23_spill]] }
  0xd2   : > { %s4768_s3 = scalar_select %p4331_p10, 1, 0 }
  0xd3   : > { %s532_s13 = scalar_lea.vmem [#allocation2], %s3116_s18  ;;  %p4341_p11 = pnand %p3546_p4, %p52_p2 }
  0xd4   : > { %s539_s20 = sshll.u32 %s532_s13, 4  ;;  %s529_s17 = scalar_lea.sflag [#allocation3], %s528_s12  ;;  %s4345_s20 = int_to_ptr.vmem [resolvable:$true] %s539_s20 }
  0xd5   : > { %p3880_p8 = pneg %p4341_p11 }
  0xd7   : > { %s4339_s16 = scalar_lea.hbm %s4769_s14, %s3117_s19  ;;  %s3883_s6 = scalar_lea.hbm %s4769_s14, 256 }
  0xd8   : > { %s3878_s4 = scalar_lea.hbm %s4339_s16, 128  ;;  %p3884_p1 = scmp.lt.u32.totalorder %s4339_s16, %s4769_s14 }
  0xd9   : > { %p3879_p12 = scmp.ne.s32.totalorder %s4339_s16, %s3878_s4  ;;  %p3885_p3 = scmp.lt.u32.totalorder %s3883_s6, %s3878_s4 }
  0xda   : > { %p3887_p5 = scmp.lt.u32.totalorder %s3878_s4, %s4339_s16 }
  0xdb   : > { %p3881_p13 = pnand %p3880_p8, %p3879_p12  ;;  %p3886_p2 = por %p3885_p3, %p3884_p1 }
  0xdd   : > { %p3882_p0 = pneg %p3881_p13  ;;  %p3888_p9 = por %p3887_p5, %p3886_p2 }
  0xdf   : > { %p3889_p4 = pnand %p3888_p9, %p3882_p0 }
  0xe1   : > { %3892 = shalt.err (!%p3889_p4)
}
  0xe2   : > { %s3893_s12 = scalar_lea.vmem %s4345_s20, 128  ;;  %s4001_s19 = smov [#allocation2]  }
  0xe3   : > { %p3894_p12 = scmp.ne.s32.totalorder %s4345_s20, %s3893_s12  ;;  %s3898_s18 = sshll.u32 %s4001_s19, 4  ;;  %s3899_s18 = int_to_ptr.vmem [resolvable:$false] %s3898_s18 }
  0xe4   : > { %s3900_s25 = scalar_lea.vmem %s3899_s18, 256  ;;  %p3901_p6 = scmp.lt.s32.totalorder %s4345_s20, %s3899_s18 }
  0xe5   : > { %p3896_p13 = pnand %p3894_p12, %p3880_p8  ;;  %p3902_p1 = scmp.lt.s32.totalorder %s3900_s25, %s3893_s12 }
  0xe7   : > { %p3897_p10 = pneg %p3896_p13  ;;  %p3903_p3 = por %p3902_p1, %p3901_p6 }
  0xe9   : > { %p3904_p2 = pnand %p3903_p3, %p3897_p10 }
  0xeb   : > { %3907 = shalt.err (!%p3904_p2)
}
  0xec   : > { %3534 = dma.hbm_to_vmem [thread:$0]  (!%p4341_p11), %s4339_s16, 128, %s4345_s20, %s529_s17  }
  0xed   : > { %p4771_p0 = scmp.ne.s32.totalorder %s4758_s28, 0 }
  0xee   : > { %s4375_s4 = sand.u32 (!%p4771_p0), 1, %s3982_s22  }
  0xef   : > { %556 = sbr.rel (%p4771_p0) target bundleno = 5223 (0x1467), region = 84  ;;  %s3119_s6 = sshll.u32 (!%p4771_p0), %s4375_s4, 3 }
  0xf0   : > { %s559_s13 = scalar_lea.sflag (!%p4771_p0), [#allocation3], %s4375_s4  ;;  %s4381_s12 = scalar_lea.vmem (!%p4771_p0), [#allocation2], %s3119_s6 }
  0xf6   : > { %3953 = dma.done.wait (%p4321_p7), %s559_s13, 128  }
  0xf7   : > { %3955 = vsyncadd (%p4321_p7), %s559_s13, 4294967168  ;;  %p4772_p6 = scmp.eq.s32.totalorder %s4124_s27, 0 }
  0xf9   : > { %3957 = dma.done.wait (%p4772_p6), [#allocation6], 272   ;;  %p4773_p10 = pmov %p4772_p6 }
  0xfa   : > { %p4774_p11 = pmov %p4772_p6 }
  0xfb   : > { %3959 = vsyncadd (%p4773_p10), [#allocation6], 4294967024 }
  0xfc   : > { %3961 = dma.done.wait (%p4774_p11), [#allocation9], 32   ;;  %p4775_p8 = pmov %p4772_p6 }
  0xfd   : > { %p4776_p5 = pmov %p4772_p6 }
  0xfe   : > { %3963 = vsyncadd (%p4775_p8), [#allocation9], 4294967264 }
  0xff   : > { %3965 = dma.done.wait (%p4776_p5), [#allocation12], 528   ;;  %p4777_p9 = pmov %p4776_p5 }
 0x100   : > { %p4778_p7 = pmov %p4776_p5 }
 0x101   : > { %3967 = vsyncadd (%p4777_p9), [#allocation12], 4294966768 }
 0x102   : > { %3969 = dma.done.wait (%p4778_p7), [#allocation15], 16   ;;  %p4779_p4 = pmov %p4776_p5 }
 0x103   : > { %p644_p12 = scmp.lt.s32.totalorder %s4124_s27, 1  ;;  %v4002_v0 = vmov 0.0|0.0   ;;  %vm4003_vm0 = vmmov 0   ;;  %v4004_v1 = vmov 0.0   ;;  %s4780_s1 = sld [smem:[#allocation24_spill]]  ;;  %vm746_vm1 = vcmask 130048  }
 0x104   : > { %3971 = vsyncadd (%p4779_p4), [#allocation15], 4294967280  ;;  %3429 = vmatprep.subr.bf16.mxu0 %v4002_v0  ;;  %3272 = vmatprep.mubr.msk.f32.mxu0 %vm4003_vm0, %v4004_v1  ;;  %v737_v2 = vld [vmem:[#allocation5] sm:$0xff]  ;;  %v738_v3 = vld [vmem:[#allocation5 + $0x8] sm:$0xff]  ;;  %s4781_s2 = sld [smem:[#allocation25_spill]]  ;;  %vm663_vm2 = vcmask 261120  }
 0x105   : > { %s645_s28 = scalar_select %p644_p12, %s4124_s27, 1  ;;  %v3435_v5 = vpack.c.bf16 %v738_v3, %v737_v2  ;;  %v4428_v13 = vld [vmem:[%s4381_s12] sm:$0xff]  ;;  %vm828_vm3 = vcmask 64512   ;;  %vm908_vm5 = vcmask 97280   ;;  %vm926_vm6 = vcmask 1043456  }
 0x106   : > { %v3132_v14 = vld [vmem:[#allocation7] ss:$0 sm:$0xff]  ;;  %vm4439_vm4 = vmpackc.low %vm828_vm3, %vm828_vm3  ;;  %s4005_s17 = smov 120   ;;  %s4006_s19 = smov 96   ;;  %vm4008_vm7 = vmmov 1  }
 0x107   : > { %s3193_s30 = sshll.u32 %s645_s28, 4  ;;  %3436 = vmatprep.subr.bf16.mxu1 %v3435_v5  ;;  %s4007_s18 = smov 88   ;;  %vm4466_vm8 = vmpackc.low %vm926_vm6, %vm4008_vm7 }
 0x108   : > { %3438 = vmatpush3.bf16.msra.mxu1 %v3435_v5  ;;  %s4009_s25 = smov 112   ;;  %s4010_s13 = smov 104  }
 0x109   : > { %s648_s29 = scalar_lea.vmem %s4780_s1, %s3193_s30  ;;  %3439 = vmatprep.subr.bf16.mxu1 %v4002_v0  ;;  %s4011_s28 = smov 80  }
 0x10a   : > { %v650_v4 = vld [vmem:[%s648_s29] sm:$0xff]  ;;  %v653_v7 = vld [vmem:[%s4781_s2 + $0x8] sm:$0xff]  ;;  %v654_v9 = vld [vmem:[%s4781_s2 + $0x10] sm:$0xff]  ;;  %s4787_s12 = sld [smem:[#allocation29_spill]]  ;;  %s4012_s30 = smov 72  }
 0x10b   : > { %3279 = vmatprep.mubr.msk.f32.mxu1 %vm746_vm1, %v650_v4  ;;  %v652_v6 = vld [vmem:[%s4781_s2] sm:$0xff]  ;;  %v655_v10 = vld [vmem:[%s4781_s2 + $0x18] sm:$0xff]  ;;  %v651_v11 = vld [vmem:[%s648_s29 + $0x8] sm:$0xf]  ;;  %s4784_s29 = sld [smem:[#allocation26_spill]]  ;;  %s4788_s20 = sld [smem:[#allocation31_spill]] }
 0x10c   : > { %v3430_v8 = vpack.c.bf16 %v653_v7, %v652_v6  ;;  %v3433_v12 = vpack.c.bf16 %v655_v10, %v654_v9  ;;  %3280 = vmatmul.mubr.msk.f32.vlgmr.msra.gmra.mrb[0].mxu1 %vm746_vm1, %v651_v11  ;;  %s4792_s5 = sld [smem:[#allocation35_spill]]  ;;  %s2944_s16 = scalar_lea.sflag [#allocation4], %s4375_s4 }
 0x10d   : > { %3286 = vmatprep.mubr.msk.f32.mxu1 %vm4003_vm0, %v4004_v1  ;;  %p4793_p1 = scmp.ne.s32.totalorder %s4767_s15, 0 }
 0x10e   : > { %3431 = vmatpush3.bf16.msra.mxu0 %v3430_v8 }
 0x10f   : > { %3432 = vmatprep.subr.bf16.mxu0 %v4002_v0 }
 0x110   : > { %v1001_v53 = vld [vmem:[%s4787_s12] sm:$0xff]  ;;  %v3145_v59 = vld [vmem:[%s4787_s12 + $0x8] sm:$0xff] }
 0x111   : > { %v3130_v20 = vld [vmem:[%s4784_s29] ss:$0 sm:$0xff]  ;;  %s4789_s29 = sld [smem:[#allocation32_spill]] }
 0x112   : > { %3434 = vmatpush3.bf16.msra.mxu0 %v3433_v12 }
 0x113   : > { %3443 = vmatprep.subr.bf16.mxu0 %v4002_v0 }
 0x115   : > { %3273 = vmatmul.mubr.msk.f32.vlgmr.msra.gmra.mrb[0].mxu0 %vm663_vm2, %v4428_v13 }
 0x116   : > { %3293 = vmatprep.mubr.msk.f32.mxu0 %vm4003_vm0, %v4004_v1 }
 0x1df   : > { %v3281_v15 = vpop.f32.mrb[0].mxu1 }
 0x1e0   : > { %v825_v16 = vadd.f32 %v3281_v15, %v3132_v14  ;;  %v819_v17 = vpop.f32.mrb[1].mxu1 }
 0x1e1   : > { %v820_v18 = vadd.f32 %v3132_v14, %v819_v17 }
 0x1e3   : > { %v4446_v21 = vpack.i.bf16 %v825_v16, %v820_v18  ;;  %v3440_v22 = vpack.c.bf16 %v825_v16, %v820_v18 }
 0x1e5   : > { %3617 = vrot.lane.b32.xlu1 %v4446_v21, %s4005_s17  ;;  %3442 = vmatpush3.bf16.xpose.msk.msra.mxu1 %vm4439_vm4, %v3440_v22 }
 0x1e6   : > { %3451 = vmatprep.subr.bf16.mxu1 %v4002_v0 }
 0x1e8   : > { %v733_v23 = vpop.f32.mrb[0].mxu0 }
 0x1e9   : > { %v3274_v24 = vpop.f32.mrb[1].mxu0  ;;  %v4452_v25 = vadd.f32 %v3130_v20, %v733_v23 }
 0x1eb   : > { %1002 = vrot.lane.b32.xlu1 %v4452_v25, %s4005_s17 }
 0x1ec   : > { %3287 = vmatmul.mubr.msk.f32.vlgmr.msra.gmra.mrb[2].mxu1 %vm828_vm3, %v4452_v25 }
 0x1ed   : > { %3307 = vmatprep.mubr.msk.f32.mxu1 %vm4003_vm0, %v4004_v1 }
 0x257   : > { %v3618_v38 = vpop.permute.xlu1 %3617 }
 0x258   : > { %v3620_v42 = vunpack.i.h.bf16 %v3618_v38  ;;  %v3619_v43 = vunpack.i.l.bf16 %v3618_v38 }
 0x25a   : > { %v3448_v45 = vpack.c.bf16 %v3620_v42, %v3619_v43 }
 0x25d   : > { %v1003_v46 = vpop.permute.xlu1 %1002 }
 0x2bf   : > { %v904_v26 = vpop.f32.mrb[2].mxu1 }
 0x2c0   : > { %v3288_v27 = vpop.f32.mrb[3].mxu1  ;;  %v909_v28 = vsel %vm908_vm5, %v904_v26, -inf }
 0x2c1   : > { %910 = vmax.xlane.f32.xlu0 %v909_v28 }
 0x2d7   : > { %3612 = vrot.lane.b32.xlu0 %v4446_v21, %s4006_s19 }
 0x2db   : > { %3622 = vrot.lane.b32.xlu0 %v4446_v21, %s4007_s18 }
 0x34e   : > { %v911_v29 = vpop.xlane.xlu0 %910 }
 0x34f   : > { %v912_v30 = vsub.f32 %v904_v26, %v911_v29 }
 0x351   : > { %v913_v31 = vmul.f32 1.442695, %v912_v30 }
 0x352   : > { %v3613_v32 = vpop.permute.xlu0 %3612 }
 0x353   : > { %3646 = vpow2.f32 %v913_v31  ;;  %v3615_v33 = vunpack.i.h.bf16 %v3613_v32  ;;  %v3614_v34 = vunpack.i.l.bf16 %v3613_v32 }
 0x355   : > { %v3444_v36 = vpack.c.bf16 %v3615_v33, %v3614_v34 }
 0x356   : > { %v3623_v37 = vpop.permute.xlu0 %3622 }
 0x357   : > { %v3625_v39 = vunpack.i.h.bf16 %v3623_v37  ;;  %v3624_v40 = vunpack.i.l.bf16 %v3623_v37  ;;  %3446 = vmatpush3.bf16.msk.msra.mxu0 %vm4466_vm8, %v3444_v36 }
 0x358   : > { %3447 = vmatprep.subr.bf16.mxu0 %v4002_v0 }
 0x359   : > { %v3452_v41 = vpack.c.bf16 %v3625_v39, %v3624_v40 }
 0x35b   : > { %3454 = vmatpush3.bf16.msk.msra.mxu1 %vm4466_vm8, %v3452_v41 }
 0x35c   : > { %3310 = vmatprep.subr.mxu1 %v4004_v1 }
 0x35d   : > { %v3647_v44 = vpop.eup %3646 }
 0x35e   : > { %3294 = vmatmul.mubr.msk.f32.vlgmr.msra.gmra.mrb[2].mxu0 %vm908_vm5, %v3647_v44  ;;  %v915_v52 = vsel %vm908_vm5, %v3647_v44, 0.0  ;;  %v3153_v44 = vld [vmem:[%s4787_s12 + $0x10] sm:$0xff] }
 0x35f   : > { %3300 = vmatprep.mubr.msk.f32.mxu0 %vm4003_vm0, %v4004_v1 }
 0x360   : > { %3450 = vmatpush3.bf16.xpose.msk.msra.mxu0 %vm4439_vm4, %v3448_v45 }
 0x361   : > { %3315 = vmatprep.subr.mxu0 %v4004_v1 }
 0x367   : > { %3301 = vmatmul.mubr.msk.f32.vlgmr.msra.gmra.mrb[4].mxu0 %vm828_vm3, %v1003_v46 }
 0x368   : > { %3317 = vmatprep.mubr.msk.f32.mxu0 %vm4003_vm0, %v4004_v1  ;;  %3316 = vmatpush3.msra.mxu0 %v1001_v53 }
 0x369   : > { %3459 = vmatprep.subr.bf16.mxu0 %v4002_v0 }
 0x431   : > { %v995_v47 = vpop.f32.mrb[2].mxu0 }
 0x432   : > { %v3295_v48 = vpop.f32.mrb[3].mxu0 }
 0x43a   : > { %v1080_v49 = vpop.f32.mrb[4].mxu0 }
 0x43b   : > { %v3302_v50 = vpop.f32.mrb[5].mxu0  ;;  %v1084_v51 = vsel %vm908_vm5, %v1080_v49, -inf }
 0x43c   : > { %1085 = vmax.xlane.f32.xlu1 %v1084_v51 }
 0x44d   : > { %3627 = vrot.lane.b32.xlu1 %v4446_v21, %s4009_s25 }
 0x451   : > { %3632 = vrot.lane.b32.xlu1 %v4446_v21, %s4010_s13 }
 0x455   : > { %1572 = vrot.lane.b32.xlu1 %v4452_v25, %s4010_s13 }
 0x479   : > { %916 = vadd.xlane.f32.xlu1 %v915_v52 }
 0x48a   : > { %3637 = vrot.lane.b32.xlu1 %v4446_v21, %s4011_s28 }
 0x4c9   : > { %v1086_v54 = vpop.xlane.xlu1 %1085 }
 0x4ca   : > { %v1087_v55 = vsub.f32 %v1080_v49, %v1086_v54 }
 0x4cc   : > { %v1088_v56 = vmul.f32 1.442695, %v1087_v55 }
 0x4cd   : > { %v3628_v60 = vpop.permute.xlu1 %3627 }
 0x4ce   : > { %3648 = vpow2.f32 %v1088_v56  ;;  %v3630_v9 = vunpack.i.h.bf16 %v3628_v60  ;;  %v3629_v10 = vunpack.i.l.bf16 %v3628_v60 }
 0x4d0   : > { %v3456_v16 = vpack.c.bf16 %v3630_v9, %v3629_v10 }
 0x4d1   : > { %v3633_v61 = vpop.permute.xlu1 %3632 }
 0x4d2   : > { %v3635_v17 = vunpack.i.h.bf16 %v3633_v61  ;;  %v3634_v18 = vunpack.i.l.bf16 %v3633_v61 }
 0x4d4   : > { %v3464_v20 = vpack.c.bf16 %v3635_v17, %v3634_v18 }
 0x4d5   : > { %v1573_v62 = vpop.permute.xlu1 %1572 }
 0x4d8   : > { %v3649_v57 = vpop.eup %3648 }
 0x4d9   : > { %3308 = vmatmul.mubr.msk.f32.vlgmr.msra.gmra.mrb[4].mxu1 %vm908_vm5, %v3649_v57  ;;  %v1090_v58 = vsel %vm908_vm5, %v3649_v57, 0.0 }
 0x4da   : > { %1091 = vadd.xlane.f32.xlu0 %v1090_v58  ;;  %3312 = vmatprep.mubr.msk.f32.mxu1 %vm4003_vm0, %v4004_v1 }
 0x4db   : > { %3311 = vmatpush3.msra.mxu1 %v3145_v59 }
 0x4dc   : > { %3455 = vmatprep.subr.bf16.mxu1 %v4002_v0 }
 0x4f0   : > { %1323 = vrot.lane.b32.xlu0 %v4452_v25, %s4009_s25 }
 0x506   : > { %v917_v63 = vpop.xlane.xlu1 %916 }
 0x507   : > { %3650 = vrcp.f32 %v917_v63 }
 0x50a   : > { %v3638_v2 = vpop.permute.xlu1 %3637 }
 0x50b   : > { %v3640_v3 = vunpack.i.h.bf16 %v3638_v2  ;;  %v3639_v4 = vunpack.i.l.bf16 %v3638_v2 }
 0x50d   : > { %v3460_v7 = vpack.c.bf16 %v3640_v3, %v3639_v4 }
 0x511   : > { %v3651_v5 = vpop.eup %3650 }
 0x512   : > { %v1000_v6 = vmul.f32 %v3651_v5, %v995_v47 }
 0x514   : > { %3318 = vmatmul.mubr.msk.f32.vlgmr.msra.gmra.mrb[6].mxu0 %vm828_vm3, %v1000_v6 }
 0x515   : > { %3462 = vmatpush3.bf16.msk.msra.mxu0 %vm4466_vm8, %v3460_v7  ;;  %3331 = vmatprep.mubr.msk.f32.mxu0 %vm4003_vm0, %v4004_v1 }
 0x516   : > { %3334 = vmatprep.subr.mxu0 %v4004_v1 }
 0x567   : > { %v1092_v8 = vpop.xlane.xlu0 %1091 }
 0x568   : > { %3652 = vrcp.f32 %v1092_v8 }
 0x56b   : > { %v1324_v22 = vpop.permute.xlu0 %1323 }
 0x572   : > { %v3653_v11 = vpop.eup %3652 }
 0x5ac   : > { %v1169_v12 = vpop.f32.mrb[4].mxu1 }
 0x5ad   : > { %v1174_v14 = vmul.f32 %v3653_v11, %v1169_v12  ;;  %v3309_v15 = vpop.f32.mrb[5].mxu1  ;;  %v1860_v11 = vld [vmem:[#allocation13] sm:$0xff]  ;;  %v1861_v12 = vld [vmem:[#allocation13 + $0x8] sm:$0xff] }
 0x5ae   : > { %v1862_v15 = vld [vmem:[#allocation13 + $0x10] sm:$0xff] }
 0x5af   : > { %3313 = vmatmul.mubr.msk.f32.vlgmr.msra.gmra.mrb[6].mxu1 %vm828_vm3, %v1174_v14  ;;  %v3472_v14 = vpack.c.bf16 %v1861_v12, %v1860_v11 }
 0x5b0   : > { %3458 = vmatpush3.bf16.xpose.msk.msra.mxu1 %vm4439_vm4, %v3456_v16  ;;  %3324 = vmatprep.mubr.msk.f32.mxu1 %vm4003_vm0, %v4004_v1  ;;  %v1863_v16 = vld [vmem:[#allocation13 + $0x18] sm:$0xff] }
 0x5b1   : > { %3463 = vmatprep.subr.bf16.mxu1 %v4002_v0  ;;  %v3475_v17 = vpack.c.bf16 %v1863_v16, %v1862_v15 }
 0x5b7   : > { %3325 = vmatmul.mubr.msk.f32.vlgmr.msra.gmra.mrb[8].mxu1 %vm828_vm3, %v1324_v22 }
 0x5b8   : > { %3466 = vmatpush3.bf16.xpose.msk.msra.mxu1 %vm4439_vm4, %v3464_v20  ;;  %3343 = vmatprep.mubr.msk.f32.mxu1 %vm4003_vm0, %v4004_v1 }
 0x5b9   : > { %3471 = vmatprep.subr.bf16.mxu1 %v4002_v0 }
 0x5bf   : > { %3344 = vmatmul.mubr.msk.f32.vlgmr.msra.gmra.mrb[10].mxu1 %vm828_vm3, %v1573_v62  ;;  %v3162_v62 = vld [vmem:[#allocation8] ss:$0 sm:$0xff] }
 0x5c0   : > { %3366 = vmatprep.mubr.msk.f32.mxu1 %vm4003_vm0, %v4004_v1  ;;  %3473 = vmatpush3.bf16.msra.mxu1 %v3472_v14 }
 0x5c1   : > { %3474 = vmatprep.subr.bf16.mxu1 %v4002_v0 }
 0x5c4   : > { %3476 = vmatpush3.bf16.msra.mxu1 %v3475_v17 }
 0x5c5   : > { %3379 = vmatprep.subr.mxu1 %v4004_v1 }
 0x5e7   : > { %v1319_v23 = vpop.f32.mrb[6].mxu0 }
 0x5e8   : > { %v3319_v24 = vpop.f32.mrb[7].mxu0 }
 0x682   : > { %v1246_v25 = vpop.f32.mrb[6].mxu1 }
 0x683   : > { %v1320_v26 = vadd.f32 %v1319_v23, %v1246_v25  ;;  %v3314_v27 = vpop.f32.mrb[7].mxu1  ;;  %v3163_v23 = vld [vmem:[#allocation10] ss:$0 sm:$0xff]  ;;  %v3164_v25 = vld [vmem:[#allocation11] ss:$0 sm:$0xff] }
 0x68a   : > { %v1401_v28 = vpop.f32.mrb[8].mxu1 }
 0x68b   : > { %v3326_v29 = vpop.f32.mrb[9].mxu1  ;;  %v1405_v19 = vsel %vm908_vm5, %v1401_v28, -inf }
 0x68c   : > { %1406 = vmax.xlane.f32.xlu0 %v1405_v19 }
 0x692   : > { %v1650_v30 = vpop.f32.mrb[10].mxu1 }
 0x693   : > { %v3345_v31 = vpop.f32.mrb[11].mxu1  ;;  %v1654_v32 = vsel %vm908_vm5, %v1650_v30, -inf }
 0x694   : > { %1655 = vmax.xlane.f32.xlu0 %v1654_v32 }
 0x719   : > { %v1407_v33 = vpop.xlane.xlu0 %1406 }
 0x71a   : > { %v1408_v34 = vsub.f32 %v1401_v28, %v1407_v33 }
 0x71c   : > { %v1409_v36 = vmul.f32 1.442695, %v1408_v34 }
 0x71e   : > { %3654 = vpow2.f32 %v1409_v36 }
 0x721   : > { %v1656_v37 = vpop.xlane.xlu0 %1655 }
 0x722   : > { %v1657_v38 = vsub.f32 %v1650_v30, %v1656_v37 }
 0x724   : > { %v1658_v39 = vmul.f32 1.442695, %v1657_v38 }
 0x726   : > { %3656 = vpow2.f32 %v1658_v39 }
 0x728   : > { %v3655_v40 = vpop.eup %3654 }
 0x729   : > { %3332 = vmatmul.mubr.msk.f32.vlgmr.msra.gmra.mrb[8].mxu0 %vm908_vm5, %v3655_v40  ;;  %v1411_v41 = vsel %vm908_vm5, %v3655_v40, 0.0 }
 0x72a   : > { %1412 = vadd.xlane.f32.xlu0 %v1411_v41  ;;  %3336 = vmatprep.mubr.msk.f32.mxu0 %vm4003_vm0, %v4004_v1 }
 0x72b   : > { %3335 = vmatpush3.msra.mxu0 %v3153_v44 }
 0x72c   : > { %3467 = vmatprep.subr.bf16.mxu0 %v4002_v0  ;;  %v3165_v0 = vld [vmem:[#allocation14] ss:$0 sm:$0xff] }
 0x730   : > { %v3657_v42 = vpop.eup %3656 }
 0x731   : > { %v1660_v43 = vsel %vm908_vm5, %v3657_v42, 0.0 }
 0x732   : > { %1661 = vadd.xlane.f32.xlu1 %v1660_v43 }
 0x740   : > { %3642 = vrot.lane.b32.xlu0 %v4446_v21, %s4012_s30  ;;  %v3160_v21 = vld [vmem:[%s4787_s12 + $0x18] sm:$0xff] }
 0x7b7   : > { %v1413_v45 = vpop.xlane.xlu0 %1412 }
 0x7b8   : > { %3658 = vrcp.f32 %v1413_v45 }
 0x7bb   : > { %v3643_v46 = vpop.permute.xlu0 %3642 }
 0x7bc   : > { %v3645_v47 = vunpack.i.h.bf16 %v3643_v46  ;;  %v3644_v48 = vunpack.i.l.bf16 %v3643_v46 }
 0x7be   : > { %v3468_v53 = vpack.c.bf16 %v3645_v47, %v3644_v48 }
 0x7bf   : > { %v1662_v54 = vpop.xlane.xlu1 %1661 }
 0x7c0   : > { %3660 = vrcp.f32 %v1662_v54 }
 0x7c2   : > { %v3659_v49 = vpop.eup %3658 }
 0x7ca   : > { %v3661_v57 = vpop.eup %3660 }
 0x7fc   : > { %v1490_v50 = vpop.f32.mrb[8].mxu0 }
 0x7fd   : > { %v1495_v51 = vmul.f32 %v3659_v49, %v1490_v50  ;;  %v3333_v52 = vpop.f32.mrb[9].mxu0 }
 0x7fe   : > { %v3173_v52 = vld [vmem:[%s4788_s20 + $0x8] sm:$0xff] }
 0x7ff   : > { %3337 = vmatmul.mubr.msk.f32.vlgmr.msra.gmra.mrb[10].mxu0 %vm828_vm3, %v1495_v51 }
 0x800   : > { %3470 = vmatpush3.bf16.msk.msra.mxu0 %vm4466_vm8, %v3468_v53  ;;  %3350 = vmatprep.mubr.msk.f32.mxu0 %vm4003_vm0, %v4004_v1  ;;  %v2108_v53 = vld [vmem:[%s4788_s20] sm:$0xff] }
 0x801   : > { %3353 = vmatprep.subr.mxu0 %v4004_v1 }
 0x803   : > { %3351 = vmatmul.mubr.msk.f32.vlgmr.msra.gmra.mrb[12].mxu0 %vm908_vm5, %v3657_v42 }
 0x804   : > { %3355 = vmatprep.mubr.msk.f32.mxu0 %vm4003_vm0, %v4004_v1  ;;  %3354 = vmatpush3.msra.mxu0 %v3160_v21 }
 0x805   : > { %3369 = vmatprep.subr.mxu0 %v4004_v1 }
 0x8d2   : > { %v1567_v35 = vpop.f32.mrb[10].mxu0 }
 0x8d3   : > { %v1571_v55 = vadd.f32 %v1567_v35, %v1320_v26  ;;  %v3338_v56 = vpop.f32.mrb[11].mxu0 }
 0x8d6   : > { %v1739_v58 = vpop.f32.mrb[12].mxu0 }
 0x8d7   : > { %v1744_v59 = vmul.f32 %v3661_v57, %v1739_v58  ;;  %v3352_v60 = vpop.f32.mrb[13].mxu0 }
 0x8d9   : > { %3356 = vmatmul.mubr.msk.f32.vlgmr.msra.gmra.mrb[14].mxu0 %vm828_vm3, %v1744_v59 }
 0x8da   : > { %3371 = vmatprep.mubr.msk.f32.mxu0 %vm4003_vm0, %v4004_v1 }
 0x9ac   : > { %v1816_v61 = vpop.f32.mrb[14].mxu0 }
 0x9ad   : > { %v1820_v63 = vadd.f32 %v1816_v61, %v1571_v55  ;;  %v3357_v2 = vpop.f32.mrb[15].mxu0 }
 0x9af   : > { %v1828_v3 = vadd.f32 %v3162_v62, %v1820_v63 }
 0x9b1   : > { %v1829_v4 = vadd.f32 %v1828_v3, %v4428_v13 }
 0x9b3   : > { %v1832_v5 = vsel %vm663_vm2, %v1829_v4, 0.0 }
 0x9b4   : > { %1833 = vadd.xlane.f32.xlu0 %v1832_v5 }
 0xa41   : > { %v1834_v6 = vpop.xlane.xlu0 %1833 }
 0xa42   : > { %v1836_v7 = vmul.f32 0.03125, %v1834_v6 }
 0xa44   : > { %v1837_v8 = vsub.f32 %v1829_v4, %v1836_v7 }
 0xa46   : > { %v1838_v9 = vmul.f32 %v1837_v8, %v1837_v8 }
 0xa48   : > { %v1839_v10 = vsel %vm663_vm2, %v1838_v9, 0.0 }
 0xa49   : > { %1840 = vadd.xlane.f32.xlu1 %v1839_v10 }
 0xad6   : > { %v1841_v13 = vpop.xlane.xlu1 %1840 }
 0xad7   : > { %v1842_v18 = vmul.f32 0.03125, %v1841_v13 }
 0xad9   : > { %v1843_v20 = vadd.f32 1e-06, %v1842_v18  ;;  %v3179_v18 = vld [vmem:[%s4788_s20 + $0x10] sm:$0xff] }
 0xadb   : > { %3662 = vrsqrt.f32 %v1843_v20 }
 0xae5   : > { %v3663_v22 = vpop.eup %3662 }
 0xae6   : > { %v1845_v24 = vmul.f32 %v3663_v22, %v1837_v8 }
 0xae8   : > { %v1852_v26 = vmul.f32 %v3163_v23, %v1845_v24 }
 0xaea   : > { %v4564_v27 = vadd.f32 %v3164_v25, %v1852_v26 }
 0xaec   : > { %3367 = vmatmul.mubr.msk.f32.vlgmr.msra.gmra.mrb[12].mxu1 %vm663_vm2, %v4564_v27 }
 0xaed   : > { %3381 = vmatprep.mubr.msk.f32.mxu1 %vm4003_vm0, %v4004_v1 }
 0xbbf   : > { %v1940_v28 = vpop.f32.mrb[12].mxu1 }
 0xbc0   : > { %v4570_v29 = vadd.f32 %v3165_v0, %v1940_v28  ;;  %v3368_v19 = vpop.f32.mrb[13].mxu1 }
 0xbc2   : > { %2111 = vrot.lane.b32.xlu0 %v4570_v29, %s4007_s18  ;;  %1945 = vrot.lane.b32.xlu1 %v4570_v29, %s4006_s19  ;;  %s4014_s19 = smov 56   ;;  %s4015_s18 = smov 48  }
 0xbc6   : > { %2109 = vrot.lane.b32.xlu1 %v4570_v29, %s4005_s17  ;;  %s4013_s17 = smov 64  }
 0xc34   : > { %v2112_v30 = vpop.permute.xlu0 %2111  ;;  %v1946_v31 = vpop.permute.xlu1 %1945 }
 0xc35   : > { %3370 = vmatpush3.xpose.msk.msra.mxu0 %vm828_vm3, %v1946_v31  ;;  %3380 = vmatpush3.xpose.msk.msra.mxu1 %vm828_vm3, %v2112_v30 }
 0xc36   : > { %3374 = vmatprep.subr.mxu0 %v4004_v1  ;;  %3389 = vmatprep.subr.mxu1 %v4004_v1 }
 0xc38   : > { %3372 = vmatmul.mubr.msk.f32.vlgmr.msra.gmra.mrb[16].mxu0 %vm828_vm3, %v4570_v29  ;;  %v2110_v32 = vpop.permute.xlu1 %2109 }
 0xc39   : > { %3382 = vmatmul.mubr.msk.f32.vlgmr.msra.gmra.mrb[14].mxu1 %vm828_vm3, %v2110_v32  ;;  %3376 = vmatprep.mubr.msk.f32.mxu0 %vm4003_vm0, %v4004_v1 }
 0xc3a   : > { %3391 = vmatprep.mubr.msk.f32.mxu1 %vm4003_vm0, %v4004_v1  ;;  %3390 = vmatpush3.msra.mxu1 %v3173_v52 }
 0xc3b   : > { %3399 = vmatprep.subr.mxu1 %v4004_v1 }
 0xd0b   : > { %v2017_v33 = vpop.f32.mrb[16].mxu0 }
 0xd0c   : > { %v3373_v34 = vpop.f32.mrb[17].mxu0  ;;  %v2183_v36 = vpop.f32.mrb[14].mxu1  ;;  %v2021_v37 = vsel %vm828_vm3, %v2017_v33, -inf }
 0xd0d   : > { %v3383_v38 = vpop.f32.mrb[15].mxu1  ;;  %2022 = vmax.xlane.f32.xlu1 %v2021_v37  ;;  %v2187_v39 = vsel %vm828_vm3, %v2183_v36, -inf }
 0xd0e   : > { %2188 = vmax.xlane.f32.xlu0 %v2187_v39 }
 0xd1e   : > { %2030 = vrot.lane.b32.xlu1 %v4570_v29, %s4013_s17 }
 0xd24   : > { %2196 = vrot.lane.b32.xlu0 %v4570_v29, %s4014_s19 }
 0xd28   : > { %2424 = vrot.lane.b32.xlu0 %v4570_v29, %s4011_s28  ;;  %s643_s28 = scalar_lea.vmem [#allocation16], %s3119_s6 }
 0xd2c   : > { %2422 = vrot.lane.b32.xlu0 %v4570_v29, %s4009_s25  ;;  %s3190_s25 = sshll.u32 %s4124_s27, 7  ;;  %s4017_s27 = smov [#allocation16]  }
 0xd2d   : > { %s4675_s7 = scalar_lea.hbm %s4792_s5, %s3190_s25  ;;  %s3912_s6 = sshll.u32 %s4017_s27, 4  ;;  %s3913_s6 = int_to_ptr.vmem [resolvable:$false] %s3912_s6 }
 0xd9a   : > { %v2023_v40 = vpop.xlane.xlu1 %2022 }
 0xd9b   : > { %v2024_v41 = vsub.f32 %v2017_v33, %v2023_v40  ;;  %v2189_v42 = vpop.xlane.xlu0 %2188 }
 0xd9c   : > { %v2190_v43 = vsub.f32 %v2183_v36, %v2189_v42 }
 0xd9d   : > { %v2025_v44 = vmul.f32 1.442695, %v2024_v41 }
 0xd9e   : > { %v2191_v45 = vmul.f32 1.442695, %v2190_v43  ;;  %v2031_v46 = vpop.permute.xlu1 %2030 }
 0xd9f   : > { %3664 = vpow2.f32 %v2025_v44  ;;  %3375 = vmatpush3.msra.mxu0 %v2031_v46  ;;  %v2197_v49 = vpop.permute.xlu0 %2196  ;;  %v3186_v44 = vld [vmem:[%s4789_s29] ss:$0 sm:$0xff]  ;;  %s2957_s29 = sshll.u32 %s643_s28, 4  ;;  %s4677_s29 = int_to_ptr.vmem [resolvable:$true] %s2957_s29 }
 0xda0   : > { %3666 = vpow2.f32 %v2191_v45  ;;  %3384 = vmatprep.subr.mxu0 %v4004_v1  ;;  %p3915_p0 = scmp.lt.s32.totalorder %s4677_s29, %s3913_s6 }
 0xda3   : > { %v2425_v21 = vpop.permute.xlu0 %2424 }
 0xda7   : > { %v2423_v54 = vpop.permute.xlu0 %2422 }
 0xda9   : > { %v3665_v47 = vpop.eup %3664 }
 0xdaa   : > { %v3667_v48 = vpop.eup %3666  ;;  %3377 = vmatmul.mubr.msk.f32.vlgmr.msra.gmra.mrb[18].mxu0 %vm828_vm3, %v3665_v47  ;;  %v2027_v50 = vsel %vm828_vm3, %v3665_v47, 0.0 }
 0xdab   : > { %3385 = vmatpush3.msra.mxu0 %v2197_v49  ;;  %2028 = vadd.xlane.f32.xlu0 %v2027_v50  ;;  %v2193_v51 = vsel %vm828_vm3, %v3667_v48, 0.0 }
 0xdac   : > { %2194 = vadd.xlane.f32.xlu1 %v2193_v51  ;;  %3386 = vmatprep.mubr.msk.f32.mxu0 %vm4003_vm0, %v4004_v1 }
 0xdad   : > { %3394 = vmatprep.subr.mxu0 %v4004_v1 }
 0xdae   : > { %3387 = vmatmul.mubr.msk.f32.vlgmr.msra.gmra.mrb[20].mxu0 %vm828_vm3, %v3667_v48 }
 0xdaf   : > { %3396 = vmatprep.mubr.msk.f32.mxu0 %vm4003_vm0, %v4004_v1  ;;  %3395 = vmatpush3.msra.mxu0 %v2108_v53 }
 0xdb0   : > { %3404 = vmatprep.subr.mxu0 %v4004_v1 }
 0xdbd   : > { %2509 = vrot.lane.b32.xlu1 %v4570_v29, %s4015_s18  ;;  %s4791_s18 = sld [smem:[#allocation34_spill]] }
 0xdc1   : > { %2665 = vrot.lane.b32.xlu0 %v4570_v29, %s4012_s30  ;;  %s4790_s30 = sld [smem:[#allocation33_spill]] }
 0xe38   : > { %v2029_v35 = vpop.xlane.xlu0 %2028 }
 0xe39   : > { %3668 = vrcp.f32 %v2029_v35  ;;  %v2195_v55 = vpop.xlane.xlu1 %2194 }
 0xe3a   : > { %3670 = vrcp.f32 %v2195_v55 }
 0xe3c   : > { %v2666_v16 = vpop.permute.xlu0 %2665 }
 0xe3d   : > { %v2510_v60 = vpop.permute.xlu1 %2509 }
 0xe43   : > { %v3669_v56 = vpop.eup %3668 }
 0xe44   : > { %v3671_v61 = vpop.eup %3670 }
 0xe7d   : > { %v2102_v57 = vpop.f32.mrb[18].mxu0 }
 0xe7e   : > { %v2107_v58 = vmul.f32 %v3669_v56, %v2102_v57  ;;  %v3378_v59 = vpop.f32.mrb[19].mxu0 }
 0xe80   : > { %3397 = vmatmul.mubr.msk.f32.vlgmr.msra.gmra.mrb[22].mxu0 %vm828_vm3, %v2107_v58  ;;  %v3188_v58 = vld [vmem:[%s4791_s18] ss:$0 sm:$0xff] }
 0xe81   : > { %3405 = vmatpush3.msra.mxu0 %v2510_v60  ;;  %v2268_v62 = vpop.f32.mrb[20].mxu0  ;;  %3406 = vmatprep.mubr.msk.f32.mxu0 %vm4003_vm0, %v4004_v1 }
 0xe82   : > { %v2273_v63 = vmul.f32 %v3671_v61, %v2268_v62  ;;  %v3388_v2 = vpop.f32.mrb[21].mxu0  ;;  %3414 = vmatprep.subr.mxu0 %v4004_v1 }
 0xe84   : > { %3392 = vmatmul.mubr.msk.f32.vlgmr.msra.gmra.mrb[16].mxu1 %vm828_vm3, %v2273_v63 }
 0xe85   : > { %3400 = vmatpush3.xpose.msk.msra.mxu1 %vm828_vm3, %v2425_v21  ;;  %3401 = vmatprep.mubr.msk.f32.mxu1 %vm4003_vm0, %v4004_v1 }
 0xe86   : > { %3409 = vmatprep.subr.mxu1 %v4004_v1 }
 0xe88   : > { %3402 = vmatmul.mubr.msk.f32.vlgmr.msra.gmra.mrb[18].mxu1 %vm828_vm3, %v2423_v54 }
 0xe89   : > { %3411 = vmatprep.mubr.msk.f32.mxu1 %vm4003_vm0, %v4004_v1  ;;  %3410 = vmatpush3.msra.mxu1 %v3179_v18 }
 0xe8a   : > { %3419 = vmatprep.subr.mxu1 %v4004_v1 }
 0xf53   : > { %v2418_v3 = vpop.f32.mrb[22].mxu0 }
 0xf54   : > { %v3398_v4 = vpop.f32.mrb[23].mxu0 }
 0xf57   : > { %v2345_v5 = vpop.f32.mrb[16].mxu1 }
 0xf58   : > { %v2419_v6 = vadd.f32 %v2418_v3, %v2345_v5  ;;  %v3393_v7 = vpop.f32.mrb[17].mxu1 }
 0xf5b   : > { %v2496_v8 = vpop.f32.mrb[18].mxu1 }
 0xf5c   : > { %v3403_v9 = vpop.f32.mrb[19].mxu1  ;;  %v2500_v10 = vsel %vm828_vm3, %v2496_v8, -inf }
 0xf5d   : > { %2501 = vmax.xlane.f32.xlu1 %v2500_v10 }
 0xf6e   : > { %2663 = vrot.lane.b32.xlu1 %v4570_v29, %s4010_s13  ;;  %s4016_s13 = smov 40  }
 0xfea   : > { %v2502_v11 = vpop.xlane.xlu1 %2501 }
 0xfeb   : > { %v2503_v12 = vsub.f32 %v2496_v8, %v2502_v11 }
 0xfed   : > { %v2504_v14 = vmul.f32 1.442695, %v2503_v12 }
 0xfee   : > { %v2664_v13 = vpop.permute.xlu1 %2663 }
 0xfef   : > { %3672 = vpow2.f32 %v2504_v14 }
 0xff9   : > { %v3673_v15 = vpop.eup %3672 }
 0xffa   : > { %3407 = vmatmul.mubr.msk.f32.vlgmr.msra.gmra.mrb[24].mxu0 %vm828_vm3, %v3673_v15  ;;  %v2506_v17 = vsel %vm828_vm3, %v3673_v15, 0.0 }
 0xffb   : > { %3415 = vmatpush3.xpose.msk.msra.mxu0 %vm828_vm3, %v2666_v16  ;;  %2507 = vadd.xlane.f32.xlu1 %v2506_v17 }
 0xffc   : > { %3416 = vmatprep.mubr.msk.f32.mxu0 %vm4003_vm0, %v4004_v1  ;;  %3424 = vmatprep.subr.mxu0 %v4004_v1 }
 0xffe   : > { %3417 = vmatmul.mubr.msk.f32.vlgmr.msra.gmra.mrb[26].mxu0 %vm828_vm3, %v2664_v13 }
 0xfff   : > { %3426 = vmatprep.mubr.msk.f32.mxu0 %vm4003_vm0, %v4004_v1 }
0x100c   : > { %2750 = vrot.lane.b32.xlu1 %v4570_v29, %s4016_s13  ;;  %s3908_s13 = scalar_lea.vmem %s4677_s29, 128 }
0x100d   : > { %p3909_p13 = scmp.ne.s32.totalorder %s4677_s29, %s3908_s13 }
0x100f   : > { %p3910_p3 = pnand %p3909_p13, %p4793_p1 }
0x1011   : > { %p3911_p2 = pneg %p3910_p3 }
0x1088   : > { %v2508_v20 = vpop.xlane.xlu1 %2507 }
0x1089   : > { %3674 = vrcp.f32 %v2508_v20 }
0x108c   : > { %v2751_v26 = vpop.permute.xlu1 %2750 }
0x1093   : > { %v3675_v22 = vpop.eup %3674 }
0x10cd   : > { %v2581_v23 = vpop.f32.mrb[24].mxu0 }
0x10ce   : > { %v2586_v24 = vmul.f32 %v3675_v22, %v2581_v23  ;;  %v3408_v25 = vpop.f32.mrb[25].mxu0 }
0x10d0   : > { %3412 = vmatmul.mubr.msk.f32.vlgmr.msra.gmra.mrb[20].mxu1 %vm828_vm3, %v2586_v24 }
0x10d1   : > { %3420 = vmatpush3.msra.mxu1 %v2751_v26  ;;  %v2737_v0 = vpop.f32.mrb[26].mxu0  ;;  %3421 = vmatprep.mubr.msk.f32.mxu1 %vm4003_vm0, %v4004_v1  ;;  %v3184_v1 = vld [vmem:[%s4788_s20 + $0x18] sm:$0xff] }
0x10d2   : > { %v3418_v28 = vpop.f32.mrb[27].mxu0  ;;  %v2741_v29 = vsel %vm828_vm3, %v2737_v0, -inf  ;;  %3425 = vmatpush3.msra.mxu0 %v3184_v1 }
0x10d3   : > { %2742 = vmax.xlane.f32.xlu0 %v2741_v29 }
0x1160   : > { %v2743_v19 = vpop.xlane.xlu0 %2742 }
0x1161   : > { %v2744_v30 = vsub.f32 %v2737_v0, %v2743_v19 }
0x1163   : > { %v2745_v31 = vmul.f32 1.442695, %v2744_v30 }
0x1165   : > { %3676 = vpow2.f32 %v2745_v31 }
0x116f   : > { %v3677_v32 = vpop.eup %3676 }
0x1170   : > { %3422 = vmatmul.mubr.msk.f32.vlgmr.msra.gmra.mrb[22].mxu1 %vm828_vm3, %v3677_v32  ;;  %v2747_v33 = vsel %vm828_vm3, %v3677_v32, 0.0 }
0x1171   : > { %2748 = vadd.xlane.f32.xlu0 %v2747_v33 }
0x11a3   : > { %v2658_v34 = vpop.f32.mrb[20].mxu1 }
0x11a4   : > { %v2662_v36 = vadd.f32 %v2658_v34, %v2419_v6  ;;  %v3413_v37 = vpop.f32.mrb[21].mxu1 }
0x11fe   : > { %v2749_v38 = vpop.xlane.xlu0 %2748 }
0x11ff   : > { %3678 = vrcp.f32 %v2749_v38 }
0x1209   : > { %v3679_v39 = vpop.eup %3678 }
0x1243   : > { %v2822_v40 = vpop.f32.mrb[22].mxu1 }
0x1244   : > { %v2827_v41 = vmul.f32 %v3679_v39, %v2822_v40  ;;  %v3423_v42 = vpop.f32.mrb[23].mxu1 }
0x1246   : > { %3427 = vmatmul.mubr.msk.f32.vlgmr.msra.gmra.mrb[28].mxu0 %vm828_vm3, %v2827_v41 }
0x1319   : > { %v2899_v43 = vpop.f32.mrb[28].mxu0 }
0x131a   : > { %v2903_v45 = vadd.f32 %v2899_v43, %v2662_v36  ;;  %v3428_v46 = vpop.f32.mrb[29].mxu0 }
0x131c   : > { %v2911_v47 = vadd.f32 %v3186_v44, %v2903_v45 }
0x131e   : > { %v2912_v48 = vadd.f32 %v2911_v47, %v4564_v27  ;;  %v3187_v27 = vld [vmem:[%s4790_s30] ss:$0 sm:$0xff]  ;;  %s3914_s30 = scalar_lea.vmem %s3913_s6, 256 }
0x131f   : > { %p3916_p6 = scmp.lt.s32.totalorder %s3914_s30, %s3908_s13 }
0x1320   : > { %v2915_v49 = vsel %vm663_vm2, %v2912_v48, 0.0 }
0x1321   : > { %2916 = vadd.xlane.f32.xlu0 %v2915_v49  ;;  %p3917_p10 = por %p3916_p6, %p3915_p0 }
0x1323   : > { %p3918_p11 = pnand %p3917_p10, %p3911_p2 }
0x13ae   : > { %v2917_v50 = vpop.xlane.xlu0 %2916 }
0x13af   : > { %v2918_v51 = vmul.f32 0.03125, %v2917_v50 }
0x13b1   : > { %v2919_v52 = vsub.f32 %v2912_v48, %v2918_v51 }
0x13b3   : > { %v2920_v53 = vmul.f32 %v2919_v52, %v2919_v52 }
0x13b5   : > { %v2921_v21 = vsel %vm663_vm2, %v2920_v53, 0.0 }
0x13b6   : > { %2922 = vadd.xlane.f32.xlu0 %v2921_v21 }
0x1443   : > { %v2923_v54 = vpop.xlane.xlu0 %2922 }
0x1444   : > { %v2924_v35 = vmul.f32 0.03125, %v2923_v54 }
0x1446   : > { %v2925_v55 = vadd.f32 1e-06, %v2924_v35 }
0x1448   : > { %3680 = vrsqrt.f32 %v2925_v55 }
0x1452   : > { %v3681_v56 = vpop.eup %3680 }
0x1453   : > { %v2927_v57 = vmul.f32 %v3681_v56, %v2919_v52 }
0x1455   : > { %v2934_v59 = vmul.f32 %v3187_v27, %v2927_v57 }
0x1457   : > { %v2941_v60 = vadd.f32 %v3188_v58, %v2934_v59 }
0x1459   : > { %2942 = vst.msk [vmem:[%s643_s28] sm:$0xff] %vm663_vm2, %v2941_v60 }
0x145a   : > { %3921 = shalt.err (!%p3918_p11)
}
0x145b   : > { %s3922_s1 = scalar_lea.hbm %s4675_s7, 128  ;;  %s3926_s17 = scalar_lea.hbm %s4792_s5, 256 }
0x145c   : > { %p3923_p8 = scmp.ne.s32.totalorder %s4675_s7, %s3922_s1  ;;  %p3927_p7 = scmp.lt.u32.totalorder %s4675_s7, %s4792_s5 }
0x145d   : > { %p3928_p4 = scmp.lt.u32.totalorder %s3926_s17, %s3922_s1  ;;  %p3930_p13 = scmp.lt.u32.totalorder %s3922_s1, %s4675_s7 }
0x145e   : > { %p3924_p5 = pnand %p3923_p8, %p4793_p1 }
0x145f   : > { %p3929_p12 = por %p3928_p4, %p3927_p7 }
0x1460   : > { %p3925_p9 = pneg %p3924_p5 }
0x1461   : > { %p3931_p3 = por %p3930_p13, %p3929_p12 }
0x1463   : > { %p3932_p2 = pnand %p3931_p3, %p3925_p9 }
0x1465   : > { %3935 = shalt.err (!%p3932_p2)
}
0x1466   : > { %3507 = dma.vmem_to_hbm [thread:$0]  (%p4793_p1), %s4677_s29, 128, %s4675_s7, %s2944_s16  }
0x1467 PF: > { %s2969_s25 = sand.u32 1, %s3978_s21   ;;  %p4794_p0 = scmp.ne.s32.totalorder %s4768_s3, 0 }
0x1468   : > { %p4795_p6 = scmp.ge.s32.totalorder %s3990_s24, 2  ;;  %s2970_s28 = scalar_lea.sflag [#allocation4], %s2969_s25 }
0x146a   : > { %p3536_p10 = pnand %p4795_p6, %p4794_p0 }
0x146c   : > { %3973 = dma.done.wait (!%p3536_p10), %s2970_s28, 128  }
0x146d   : > { %3975 = vsyncadd (!%p3536_p10), %s2970_s28, 4294967168  ;;  %p33_p11 = scmp.ge.s32.totalorder %s4305_s0, 4   ;;  %s4796_s21 = smov %s3982_s22 }
0x146e   : > { %s4797_s22 = smov %s3986_s23  ;;  %s4798_s23 = smov %s4317_s26 }
0x146f   : > { %s4799_s24 = smov %s4305_s0  ;;  %35 = sbr.rel (!%p33_p11) target bundleno = 23 (0x17), region = 166 }
0x1476   :  { %2975 = vsyncpa [#allocation3], 1 }
0x1477   :  { %2977 = vsyncpa [#allocation3 + $0x1], 1 }
0x1478   :  { %2978 = vsyncpa [#allocation6], 1 }
0x1479   :  { %2979 = vsyncpa [#allocation9], 1 }
0x147a   :  { %2980 = vsyncpa [#allocation12], 1 }
0x147b   :  { %2981 = vsyncpa [#allocation15], 1 }
0x147c   :  { %2982 = vsyncpa [#allocation4], 1 }
0x147d   :  { %2984 = vsyncpa [#allocation4 + $0x1], 1 }

</bundles_post_ra>
